<compile_context>
chip_gen: v7x
topology: tpu7x:2x2x1
jax: 0.10.0
libtpu: 0.0.40
codegen_flags: <defaults>
</compile_context>

<pallas_src>
import functools

import jax
import jax.numpy as jnp
from jax.experimental import pallas as pl
from jax.experimental.pallas import tpu as pltpu

_LANE = 128
_DEFAULT_TILE_N = 512
_LOG_CLAMP = 100.0  # BCELoss clamps log terms at -100  <=>  softplus clamp at +100


def _cdiv(a, b):
    return -(-a // b)


def _round_up(x, m):
    return _cdiv(x, m) * m


def _pad2d(x, rows, cols, value=0):
    r, c = x.shape
    if r == rows and c == cols:
        return x
    return jnp.pad(x, ((0, rows - r), (0, cols - c)), constant_values=value)


def _tiling(n, tile_n):
    """Row-tile size, shard count (v7x megacore), blocks/shard, padded N."""
    tn = min(_round_up(tile_n, 32), _round_up(max(n, 1), 32))
    n_blocks = _cdiv(n, tn)
    num_shards = 2 if n_blocks >= 2 else 1
    bps = _cdiv(n_blocks, num_shards)
    n_pad = num_shards * bps * tn
    return tn, num_shards, bps, n_pad


def _weighted_bce_from_logits(x, t, weight, row_mask):
    """weight * row_mask * BCE(sigmoid(x), t), stable logits form with clamp."""
    # softplus(z) = max(z, 0) + log(1 + exp(-|z|)); the exp/log term is shared.
    soft_term = jnp.log(1.0 + jnp.exp(-jnp.abs(x)))
    sp_pos = jnp.minimum(jnp.maximum(x, 0.0) + soft_term, _LOG_CLAMP)   # -log(1-sigmoid)
    sp_neg = jnp.minimum(jnp.maximum(-x, 0.0) + soft_term, _LOG_CLAMP)  # -log(sigmoid)
    loss = t * sp_neg + (1.0 - t) * sp_pos
    return loss * weight * row_mask


def _row_mask(shard, step, tn, n_valid):
    row0 = (shard * pl.num_programs(1) + step) * tn
    rows = row0 + jax.lax.broadcasted_iota(jnp.int32, (tn, 1), 0)
    return (rows < n_valid).astype(jnp.float32)


def _final_write(o_ref, acc_ref):
    # One sublane reduction per shard; store into a lane-dense (8, C_pad) slab
    # (row 0 holds the per-class partial sums, other rows are zero).
    colsum = jnp.sum(acc_ref[...], axis=0, keepdims=True)               # (1, C_pad)
    row_sel = jax.lax.broadcasted_iota(jnp.int32, o_ref.shape, 0) == 0  # (8, C_pad)
    o_ref[...] = jnp.where(row_sel, colsum, 0.0)


def _seg_encode_kernel(preds_ref, cells_ref, weight_ref, o_ref, acc_ref, *,
                       n_valid, gg):
    """3-D targets branch: class-presence vector per grid cell, then BCE."""
    s = pl.program_id(0)
    i = pl.program_id(1)

    @pl.when(i == 0)
    def _():
        acc_ref[...] = jnp.zeros_like(acc_ref)
        o_ref[...] = jnp.zeros_like(o_ref)

    preds = preds_ref[...].astype(jnp.float32)        # [TN, C_pad]
    cells = cells_ref[...].astype(jnp.int32)          # [TN, GG]
    tn, c_pad = preds.shape

    # tvect[n, k] = 1.0 iff class k appears in grid cell n. Pad label
    # (== num_classes) lands on a zero-weight lane, matching torch.histc's
    # out-of-range-ignored semantics. Pure VPU compare/or, no XLU lane reduce.
    cls_iota = jax.lax.broadcasted_iota(jnp.int32, (tn, c_pad), 1)
    present = jnp.zeros((tn, c_pad), dtype=jnp.bool_)
    for k in range(gg):                               # static unrolled loop
        present = jnp.logical_or(present, cells[:, k:k + 1] == cls_iota)
    tvect = present.astype(jnp.float32)

    mask = _row_mask(s, i, tn, n_valid)
    acc_ref[...] += _weighted_bce_from_logits(preds, tvect, weight_ref[...], mask)

    @pl.when(i == pl.num_programs(1) - 1)
    def _():
        _final_write(o_ref, acc_ref)


def _bce_kernel(preds_ref, targets_ref, weight_ref, o_ref, acc_ref, *, n_valid):
    """2-D targets branch: plain weighted BCE(sigmoid(preds), targets)."""
    s = pl.program_id(0)
    i = pl.program_id(1)

    @pl.when(i == 0)
    def _():
        acc_ref[...] = jnp.zeros_like(acc_ref)
        o_ref[...] = jnp.zeros_like(o_ref)

    preds = preds_ref[...].astype(jnp.float32)
    t = targets_ref[...].astype(jnp.float32)
    tn = preds.shape[0]

    mask = _row_mask(s, i, tn, n_valid)
    acc_ref[...] += _weighted_bce_from_logits(preds, t, weight_ref[...], mask)

    @pl.when(i == pl.num_programs(1) - 1)
    def _():
        _final_write(o_ref, acc_ref)


def _launch(kernel, inputs, in_specs, tn, c_pad, num_shards, bps):
    out = pl.pallas_call(
        kernel,
        out_shape=jax.ShapeDtypeStruct((num_shards * 8, c_pad), jnp.float32),
        grid=(num_shards, bps),
        in_specs=in_specs,
        out_specs=pl.BlockSpec((8, c_pad), lambda s, i: (s, 0)),
        scratch_shapes=[pltpu.VMEM((tn, c_pad), jnp.float32)],
        compiler_params=pltpu.CompilerParams(
            dimension_semantics=("parallel", "arbitrary")),
    )(*inputs)
    return jnp.sum(out)


def seg_encode_loss(preds, targets, *, num_classes, grid_size=None,
                    weight=None, tile_n=_DEFAULT_TILE_N):
    """Forward pass of SegEncodeLoss (size_average=True, reduce=True)."""
    n, c = preds.shape
    c_pad = _round_up(max(c, 1), _LANE)

    if weight is None:
        weight = jnp.ones((c,), jnp.float32)   # empty configer 'weight' -> unweighted
    weight2d = _pad2d(jnp.asarray(weight, jnp.float32).reshape(1, c), 1, c_pad)

    if targets.ndim == 2:
        tn, num_shards, bps, n_pad = _tiling(n, tile_n)
        preds_p = _pad2d(preds, n_pad, c_pad)
        targets_p = _pad2d(targets.astype(jnp.float32), n_pad, c_pad)
        total = float(n * c)
        loss_sum = _launch(
            functools.partial(_bce_kernel, n_valid=n),
            (preds_p, targets_p, weight2d),
            [pl.BlockSpec((tn, c_pad), lambda s, i: (s * bps + i, 0)),
             pl.BlockSpec((tn, c_pad), lambda s, i: (s * bps + i, 0)),
             pl.BlockSpec((1, c_pad), lambda s, i: (0, 0))],
            tn, c_pad, num_shards, bps)
        return loss_sum / total

    # ----- 3-D [B, H, W] label-map branch -----
    assert grid_size is not None
    g = int(grid_size)
    gg = g * g
    b, h, w = targets.shape

    # Narrow label dtype before the pad/reshuffle glue: cells are the dominant
    # HBM stream (g*g labels per grid cell).
    cell_dtype = jnp.int8 if num_classes < 127 else jnp.int32
    # TODO(synk): fuse the grid-cell gather into the kernel (BlockSpec over the
    # padded [B, Hp, Wp] label map) to remove this extra HBM pass for the transpose.
    t = jnp.pad(targets.astype(cell_dtype),
                ((0, 0), (0, (-h) % g), (0, (-w) % g)),
                constant_values=num_classes)   # pad label falls outside histc range
    _, hp, wp = t.shape
    t = t.reshape(b, hp // g, g, wp // g, g).transpose(0, 1, 3, 2, 4)
    cells = t.reshape(b * (hp // g) * (wp // g), gg)

    assert preds.shape == (cells.shape[0], num_classes), \
        (preds.shape, (cells.shape[0], num_classes))
    n = cells.shape[0]
    total = float(n * num_classes)

    tn, num_shards, bps, n_pad = _tiling(n, tile_n)
    preds_p = _pad2d(preds, n_pad, c_pad)
    cells_p = _pad2d(cells, n_pad, gg, value=num_classes)

    loss_sum = _launch(
        functools.partial(_seg_encode_kernel, n_valid=n, gg=gg),
        (preds_p, cells_p, weight2d),
        [pl.BlockSpec((tn, c_pad), lambda s, i: (s * bps + i, 0)),
         pl.BlockSpec((tn, gg), lambda s, i: (s * bps + i, 0)),
         pl.BlockSpec((1, c_pad), lambda s, i: (0, 0))],
        tn, c_pad, num_shards, bps)
    return loss_sum / total


if __name__ == "__main__":
    key = jax.random.PRNGKey(0)
    k1, k2, k3, k4 = jax.random.split(key, 4)

    num_classes = 5
    b, h, w, g = 2, 16, 16, 8
    n = b * (h // g) * (w // g)  # = 8 grid cells

    # 3-D targets branch (the _get_batch_label_vector path)
    preds = jax.random.normal(k1, (n, num_classes), dtype=jnp.float32)
    targets = jax.random.randint(k2, (b, h, w), 0, num_classes, dtype=jnp.int32)
    loss_3d = seg_encode_loss(preds, targets, num_classes=num_classes, grid_size=g)

    # 2-D targets branch (targets already a multi-hot vector)
    preds2 = jax.random.normal(k3, (n, num_classes), dtype=jnp.float32)
    targets2 = (jax.random.uniform(k4, (n, num_classes)) > 0.5).astype(jnp.float32)
    loss_2d = seg_encode_loss(preds2, targets2, num_classes=num_classes)

    jax.block_until_ready((loss_3d, loss_2d))
    print("KERNEL_OK")
</pallas_src>

<mosaic_0001>
module attributes {stable_mosaic.version = 11 : i64} {
  func.func @_seg_encode_kernel(%arg0: i32, %arg1: i32, %arg2: memref<32x128xf32, #tpu.memory_space<vmem>>, %arg3: memref<32x64xi8, #tpu.memory_space<vmem>>, %arg4: memref<1x128xf32, #tpu.memory_space<vmem>>, %arg5: memref<8x128xf32, #tpu.memory_space<vmem>>, %arg6: memref<32x128xf32, #tpu.memory_space<vmem>>) attributes {dimension_semantics = [#tpu.dimension_semantics<parallel>, #tpu.dimension_semantics<arbitrary>], iteration_bounds = array<i64: 1, 1>, scalar_prefetch = 0 : i64, scratch_operands = 1 : i64, tpu.core_type = #tpu.core_type<tc>, window_params = [{transform_indices = @transform_0, window_bounds = array<i64: 32, 128>}, {transform_indices = @transform_1, window_bounds = array<i64: 32, 64>}, {pipeline_mode = #tpu.pipeline_mode<synchronous>, transform_indices = @transform_2, window_bounds = array<i64: 1, 128>}, {transform_indices = @transform_3, window_bounds = array<i64: 8, 128>}]} {
    %c0_i32 = arith.constant 0 : i32
    %0 = arith.cmpi eq, %arg1, %c0_i32 : i32
    %1 = arith.extui %0 : i1 to i32
    %c0_i32_0 = arith.constant 0 : i32
    %2 = arith.cmpi ne, %1, %c0_i32_0 : i32
    scf.if %2 {
      %cst_19 = arith.constant 0.000000e+00 : f32
      %311 = vector.broadcast %cst_19 : f32 to vector<32x128xf32>
      %c0_20 = arith.constant 0 : index
      %c0_21 = arith.constant 0 : index
      %312 = vector.load %arg6[%c0_20, %c0_21] : memref<32x128xf32, #tpu.memory_space<vmem>>, vector<32x128xf32>
      tpu.vector_store %arg6[%c0_20, %c0_21], %311 {strides = array<i32>} : memref<32x128xf32, #tpu.memory_space<vmem>>, vector<32x128xf32>,
      %cst_22 = arith.constant 0.000000e+00 : f32
      %313 = vector.broadcast %cst_22 : f32 to vector<8x128xf32>
      %c0_23 = arith.constant 0 : index
      %c0_24 = arith.constant 0 : index
      %314 = vector.load %arg5[%c0_23, %c0_24] : memref<8x128xf32, #tpu.memory_space<vmem>>, vector<8x128xf32>
      tpu.vector_store %arg5[%c0_23, %c0_24], %313 {strides = array<i32>} : memref<8x128xf32, #tpu.memory_space<vmem>>, vector<8x128xf32>,
    } else {
    }
    %c0 = arith.constant 0 : index
    %c0_1 = arith.constant 0 : index
    %3 = vector.load %arg2[%c0, %c0_1] : memref<32x128xf32, #tpu.memory_space<vmem>>, vector<32x128xf32>
    %c0_2 = arith.constant 0 : index
    %c0_3 = arith.constant 0 : index
    %4 = vector.load %arg3[%c0_2, %c0_3] : memref<32x64xi8, #tpu.memory_space<vmem>>, vector<32x64xi8>
    %5 = arith.extsi %4 : vector<32x64xi8> to vector<32x64xi32>
    %6 = tpu.iota {dimensions = array<i32: 1>} : vector<32x128xi32>
    %false = arith.constant false
    %7 = vector.broadcast %false : i1 to vector<32x128xi1>
    %8 = vector.extract_strided_slice %5 {offsets = [0, 0], sizes = [32, 1], strides = [1, 1]} : vector<32x64xi32> to vector<32x1xi32>
    %9 = vector.broadcast %8 : vector<32x1xi32> to vector<32x128xi32>
    %10 = arith.cmpi eq, %9, %6 : vector<32x128xi32>
    %11 = arith.ori %7, %10 : vector<32x128xi1>
    %12 = vector.extract_strided_slice %5 {offsets = [0, 1], sizes = [32, 1], strides = [1, 1]} : vector<32x64xi32> to vector<32x1xi32>
    %13 = vector.broadcast %12 : vector<32x1xi32> to vector<32x128xi32>
    %14 = arith.cmpi eq, %13, %6 : vector<32x128xi32>
    %15 = arith.ori %11, %14 : vector<32x128xi1>
    %16 = vector.extract_strided_slice %5 {offsets = [0, 2], sizes = [32, 1], strides = [1, 1]} : vector<32x64xi32> to vector<32x1xi32>
    %17 = vector.broadcast %16 : vector<32x1xi32> to vector<32x128xi32>
    %18 = arith.cmpi eq, %17, %6 : vector<32x128xi32>
    %19 = arith.ori %15, %18 : vector<32x128xi1>
    %20 = vector.extract_strided_slice %5 {offsets = [0, 3], sizes = [32, 1], strides = [1, 1]} : vector<32x64xi32> to vector<32x1xi32>
    %21 = vector.broadcast %20 : vector<32x1xi32> to vector<32x128xi32>
    %22 = arith.cmpi eq, %21, %6 : vector<32x128xi32>
    %23 = arith.ori %19, %22 : vector<32x128xi1>
    %24 = vector.extract_strided_slice %5 {offsets = [0, 4], sizes = [32, 1], strides = [1, 1]} : vector<32x64xi32> to vector<32x1xi32>
    %25 = vector.broadcast %24 : vector<32x1xi32> to vector<32x128xi32>
    %26 = arith.cmpi eq, %25, %6 : vector<32x128xi32>
    %27 = arith.ori %23, %26 : vector<32x128xi1>
    %28 = vector.extract_strided_slice %5 {offsets = [0, 5], sizes = [32, 1], strides = [1, 1]} : vector<32x64xi32> to vector<32x1xi32>
    %29 = vector.broadcast %28 : vector<32x1xi32> to vector<32x128xi32>
    %30 = arith.cmpi eq, %29, %6 : vector<32x128xi32>
    %31 = arith.ori %27, %30 : vector<32x128xi1>
    %32 = vector.extract_strided_slice %5 {offsets = [0, 6], sizes = [32, 1], strides = [1, 1]} : vector<32x64xi32> to vector<32x1xi32>
    %33 = vector.broadcast %32 : vector<32x1xi32> to vector<32x128xi32>
    %34 = arith.cmpi eq, %33, %6 : vector<32x128xi32>
    %35 = arith.ori %31, %34 : vector<32x128xi1>
    %36 = vector.extract_strided_slice %5 {offsets = [0, 7], sizes = [32, 1], strides = [1, 1]} : vector<32x64xi32> to vector<32x1xi32>
    %37 = vector.broadcast %36 : vector<32x1xi32> to vector<32x128xi32>
    %38 = arith.cmpi eq, %37, %6 : vector<32x128xi32>
    %39 = arith.ori %35, %38 : vector<32x128xi1>
    %40 = vector.extract_strided_slice %5 {offsets = [0, 8], sizes = [32, 1], strides = [1, 1]} : vector<32x64xi32> to vector<32x1xi32>
    %41 = vector.broadcast %40 : vector<32x1xi32> to vector<32x128xi32>
    %42 = arith.cmpi eq, %41, %6 : vector<32x128xi32>
    %43 = arith.ori %39, %42 : vector<32x128xi1>
    %44 = vector.extract_strided_slice %5 {offsets = [0, 9], sizes = [32, 1], strides = [1, 1]} : vector<32x64xi32> to vector<32x1xi32>
    %45 = vector.broadcast %44 : vector<32x1xi32> to vector<32x128xi32>
    %46 = arith.cmpi eq, %45, %6 : vector<32x128xi32>
    %47 = arith.ori %43, %46 : vector<32x128xi1>
    %48 = vector.extract_strided_slice %5 {offsets = [0, 10], sizes = [32, 1], strides = [1, 1]} : vector<32x64xi32> to vector<32x1xi32>
    %49 = vector.broadcast %48 : vector<32x1xi32> to vector<32x128xi32>
    %50 = arith.cmpi eq, %49, %6 : vector<32x128xi32>
    %51 = arith.ori %47, %50 : vector<32x128xi1>
    %52 = vector.extract_strided_slice %5 {offsets = [0, 11], sizes = [32, 1], strides = [1, 1]} : vector<32x64xi32> to vector<32x1xi32>
    %53 = vector.broadcast %52 : vector<32x1xi32> to vector<32x128xi32>
    %54 = arith.cmpi eq, %53, %6 : vector<32x128xi32>
    %55 = arith.ori %51, %54 : vector<32x128xi1>
    %56 = vector.extract_strided_slice %5 {offsets = [0, 12], sizes = [32, 1], strides = [1, 1]} : vector<32x64xi32> to vector<32x1xi32>
    %57 = vector.broadcast %56 : vector<32x1xi32> to vector<32x128xi32>
    %58 = arith.cmpi eq, %57, %6 : vector<32x128xi32>
    %59 = arith.ori %55, %58 : vector<32x128xi1>
    %60 = vector.extract_strided_slice %5 {offsets = [0, 13], sizes = [32, 1], strides = [1, 1]} : vector<32x64xi32> to vector<32x1xi32>
    %61 = vector.broadcast %60 : vector<32x1xi32> to vector<32x128xi32>
    %62 = arith.cmpi eq, %61, %6 : vector<32x128xi32>
    %63 = arith.ori %59, %62 : vector<32x128xi1>
    %64 = vector.extract_strided_slice %5 {offsets = [0, 14], sizes = [32, 1], strides = [1, 1]} : vector<32x64xi32> to vector<32x1xi32>
    %65 = vector.broadcast %64 : vector<32x1xi32> to vector<32x128xi32>
    %66 = arith.cmpi eq, %65, %6 : vector<32x128xi32>
    %67 = arith.ori %63, %66 : vector<32x128xi1>
    %68 = vector.extract_strided_slice %5 {offsets = [0, 15], sizes = [32, 1], strides = [1, 1]} : vector<32x64xi32> to vector<32x1xi32>
    %69 = vector.broadcast %68 : vector<32x1xi32> to vector<32x128xi32>
    %70 = arith.cmpi eq, %69, %6 : vector<32x128xi32>
    %71 = arith.ori %67, %70 : vector<32x128xi1>
    %72 = vector.extract_strided_slice %5 {offsets = [0, 16], sizes = [32, 1], strides = [1, 1]} : vector<32x64xi32> to vector<32x1xi32>
    %73 = vector.broadcast %72 : vector<32x1xi32> to vector<32x128xi32>
    %74 = arith.cmpi eq, %73, %6 : vector<32x128xi32>
    %75 = arith.ori %71, %74 : vector<32x128xi1>
    %76 = vector.extract_strided_slice %5 {offsets = [0, 17], sizes = [32, 1], strides = [1, 1]} : vector<32x64xi32> to vector<32x1xi32>
    %77 = vector.broadcast %76 : vector<32x1xi32> to vector<32x128xi32>
    %78 = arith.cmpi eq, %77, %6 : vector<32x128xi32>
    %79 = arith.ori %75, %78 : vector<32x128xi1>
    %80 = vector.extract_strided_slice %5 {offsets = [0, 18], sizes = [32, 1], strides = [1, 1]} : vector<32x64xi32> to vector<32x1xi32>
    %81 = vector.broadcast %80 : vector<32x1xi32> to vector<32x128xi32>
    %82 = arith.cmpi eq, %81, %6 : vector<32x128xi32>
    %83 = arith.ori %79, %82 : vector<32x128xi1>
    %84 = vector.extract_strided_slice %5 {offsets = [0, 19], sizes = [32, 1], strides = [1, 1]} : vector<32x64xi32> to vector<32x1xi32>
    %85 = vector.broadcast %84 : vector<32x1xi32> to vector<32x128xi32>
    %86 = arith.cmpi eq, %85, %6 : vector<32x128xi32>
    %87 = arith.ori %83, %86 : vector<32x128xi1>
    %88 = vector.extract_strided_slice %5 {offsets = [0, 20], sizes = [32, 1], strides = [1, 1]} : vector<32x64xi32> to vector<32x1xi32>
    %89 = vector.broadcast %88 : vector<32x1xi32> to vector<32x128xi32>
    %90 = arith.cmpi eq, %89, %6 : vector<32x128xi32>
    %91 = arith.ori %87, %90 : vector<32x128xi1>
    %92 = vector.extract_strided_slice %5 {offsets = [0, 21], sizes = [32, 1], strides = [1, 1]} : vector<32x64xi32> to vector<32x1xi32>
    %93 = vector.broadcast %92 : vector<32x1xi32> to vector<32x128xi32>
    %94 = arith.cmpi eq, %93, %6 : vector<32x128xi32>
    %95 = arith.ori %91, %94 : vector<32x128xi1>
    %96 = vector.extract_strided_slice %5 {offsets = [0, 22], sizes = [32, 1], strides = [1, 1]} : vector<32x64xi32> to vector<32x1xi32>
    %97 = vector.broadcast %96 : vector<32x1xi32> to vector<32x128xi32>
    %98 = arith.cmpi eq, %97, %6 : vector<32x128xi32>
    %99 = arith.ori %95, %98 : vector<32x128xi1>
    %100 = vector.extract_strided_slice %5 {offsets = [0, 23], sizes = [32, 1], strides = [1, 1]} : vector<32x64xi32> to vector<32x1xi32>
    %101 = vector.broadcast %100 : vector<32x1xi32> to vector<32x128xi32>
    %102 = arith.cmpi eq, %101, %6 : vector<32x128xi32>
    %103 = arith.ori %99, %102 : vector<32x128xi1>
    %104 = vector.extract_strided_slice %5 {offsets = [0, 24], sizes = [32, 1], strides = [1, 1]} : vector<32x64xi32> to vector<32x1xi32>
    %105 = vector.broadcast %104 : vector<32x1xi32> to vector<32x128xi32>
    %106 = arith.cmpi eq, %105, %6 : vector<32x128xi32>
    %107 = arith.ori %103, %106 : vector<32x128xi1>
    %108 = vector.extract_strided_slice %5 {offsets = [0, 25], sizes = [32, 1], strides = [1, 1]} : vector<32x64xi32> to vector<32x1xi32>
    %109 = vector.broadcast %108 : vector<32x1xi32> to vector<32x128xi32>
    %110 = arith.cmpi eq, %109, %6 : vector<32x128xi32>
    %111 = arith.ori %107, %110 : vector<32x128xi1>
    %112 = vector.extract_strided_slice %5 {offsets = [0, 26], sizes = [32, 1], strides = [1, 1]} : vector<32x64xi32> to vector<32x1xi32>
    %113 = vector.broadcast %112 : vector<32x1xi32> to vector<32x128xi32>
    %114 = arith.cmpi eq, %113, %6 : vector<32x128xi32>
    %115 = arith.ori %111, %114 : vector<32x128xi1>
    %116 = vector.extract_strided_slice %5 {offsets = [0, 27], sizes = [32, 1], strides = [1, 1]} : vector<32x64xi32> to vector<32x1xi32>
    %117 = vector.broadcast %116 : vector<32x1xi32> to vector<32x128xi32>
    %118 = arith.cmpi eq, %117, %6 : vector<32x128xi32>
    %119 = arith.ori %115, %118 : vector<32x128xi1>
    %120 = vector.extract_strided_slice %5 {offsets = [0, 28], sizes = [32, 1], strides = [1, 1]} : vector<32x64xi32> to vector<32x1xi32>
    %121 = vector.broadcast %120 : vector<32x1xi32> to vector<32x128xi32>
    %122 = arith.cmpi eq, %121, %6 : vector<32x128xi32>
    %123 = arith.ori %119, %122 : vector<32x128xi1>
    %124 = vector.extract_strided_slice %5 {offsets = [0, 29], sizes = [32, 1], strides = [1, 1]} : vector<32x64xi32> to vector<32x1xi32>
    %125 = vector.broadcast %124 : vector<32x1xi32> to vector<32x128xi32>
    %126 = arith.cmpi eq, %125, %6 : vector<32x128xi32>
    %127 = arith.ori %123, %126 : vector<32x128xi1>
    %128 = vector.extract_strided_slice %5 {offsets = [0, 30], sizes = [32, 1], strides = [1, 1]} : vector<32x64xi32> to vector<32x1xi32>
    %129 = vector.broadcast %128 : vector<32x1xi32> to vector<32x128xi32>
    %130 = arith.cmpi eq, %129, %6 : vector<32x128xi32>
    %131 = arith.ori %127, %130 : vector<32x128xi1>
    %132 = vector.extract_strided_slice %5 {offsets = [0, 31], sizes = [32, 1], strides = [1, 1]} : vector<32x64xi32> to vector<32x1xi32>
    %133 = vector.broadcast %132 : vector<32x1xi32> to vector<32x128xi32>
    %134 = arith.cmpi eq, %133, %6 : vector<32x128xi32>
    %135 = arith.ori %131, %134 : vector<32x128xi1>
    %136 = vector.extract_strided_slice %5 {offsets = [0, 32], sizes = [32, 1], strides = [1, 1]} : vector<32x64xi32> to vector<32x1xi32>
    %137 = vector.broadcast %136 : vector<32x1xi32> to vector<32x128xi32>
    %138 = arith.cmpi eq, %137, %6 : vector<32x128xi32>
    %139 = arith.ori %135, %138 : vector<32x128xi1>
    %140 = vector.extract_strided_slice %5 {offsets = [0, 33], sizes = [32, 1], strides = [1, 1]} : vector<32x64xi32> to vector<32x1xi32>
    %141 = vector.broadcast %140 : vector<32x1xi32> to vector<32x128xi32>
    %142 = arith.cmpi eq, %141, %6 : vector<32x128xi32>
    %143 = arith.ori %139, %142 : vector<32x128xi1>
    %144 = vector.extract_strided_slice %5 {offsets = [0, 34], sizes = [32, 1], strides = [1, 1]} : vector<32x64xi32> to vector<32x1xi32>
    %145 = vector.broadcast %144 : vector<32x1xi32> to vector<32x128xi32>
    %146 = arith.cmpi eq, %145, %6 : vector<32x128xi32>
    %147 = arith.ori %143, %146 : vector<32x128xi1>
    %148 = vector.extract_strided_slice %5 {offsets = [0, 35], sizes = [32, 1], strides = [1, 1]} : vector<32x64xi32> to vector<32x1xi32>
    %149 = vector.broadcast %148 : vector<32x1xi32> to vector<32x128xi32>
    %150 = arith.cmpi eq, %149, %6 : vector<32x128xi32>
    %151 = arith.ori %147, %150 : vector<32x128xi1>
    %152 = vector.extract_strided_slice %5 {offsets = [0, 36], sizes = [32, 1], strides = [1, 1]} : vector<32x64xi32> to vector<32x1xi32>
    %153 = vector.broadcast %152 : vector<32x1xi32> to vector<32x128xi32>
    %154 = arith.cmpi eq, %153, %6 : vector<32x128xi32>
    %155 = arith.ori %151, %154 : vector<32x128xi1>
    %156 = vector.extract_strided_slice %5 {offsets = [0, 37], sizes = [32, 1], strides = [1, 1]} : vector<32x64xi32> to vector<32x1xi32>
    %157 = vector.broadcast %156 : vector<32x1xi32> to vector<32x128xi32>
    %158 = arith.cmpi eq, %157, %6 : vector<32x128xi32>
    %159 = arith.ori %155, %158 : vector<32x128xi1>
    %160 = vector.extract_strided_slice %5 {offsets = [0, 38], sizes = [32, 1], strides = [1, 1]} : vector<32x64xi32> to vector<32x1xi32>
    %161 = vector.broadcast %160 : vector<32x1xi32> to vector<32x128xi32>
    %162 = arith.cmpi eq, %161, %6 : vector<32x128xi32>
    %163 = arith.ori %159, %162 : vector<32x128xi1>
    %164 = vector.extract_strided_slice %5 {offsets = [0, 39], sizes = [32, 1], strides = [1, 1]} : vector<32x64xi32> to vector<32x1xi32>
    %165 = vector.broadcast %164 : vector<32x1xi32> to vector<32x128xi32>
    %166 = arith.cmpi eq, %165, %6 : vector<32x128xi32>
    %167 = arith.ori %163, %166 : vector<32x128xi1>
    %168 = vector.extract_strided_slice %5 {offsets = [0, 40], sizes = [32, 1], strides = [1, 1]} : vector<32x64xi32> to vector<32x1xi32>
    %169 = vector.broadcast %168 : vector<32x1xi32> to vector<32x128xi32>
    %170 = arith.cmpi eq, %169, %6 : vector<32x128xi32>
    %171 = arith.ori %167, %170 : vector<32x128xi1>
    %172 = vector.extract_strided_slice %5 {offsets = [0, 41], sizes = [32, 1], strides = [1, 1]} : vector<32x64xi32> to vector<32x1xi32>
    %173 = vector.broadcast %172 : vector<32x1xi32> to vector<32x128xi32>
    %174 = arith.cmpi eq, %173, %6 : vector<32x128xi32>
    %175 = arith.ori %171, %174 : vector<32x128xi1>
    %176 = vector.extract_strided_slice %5 {offsets = [0, 42], sizes = [32, 1], strides = [1, 1]} : vector<32x64xi32> to vector<32x1xi32>
    %177 = vector.broadcast %176 : vector<32x1xi32> to vector<32x128xi32>
    %178 = arith.cmpi eq, %177, %6 : vector<32x128xi32>
    %179 = arith.ori %175, %178 : vector<32x128xi1>
    %180 = vector.extract_strided_slice %5 {offsets = [0, 43], sizes = [32, 1], strides = [1, 1]} : vector<32x64xi32> to vector<32x1xi32>
    %181 = vector.broadcast %180 : vector<32x1xi32> to vector<32x128xi32>
    %182 = arith.cmpi eq, %181, %6 : vector<32x128xi32>
    %183 = arith.ori %179, %182 : vector<32x128xi1>
    %184 = vector.extract_strided_slice %5 {offsets = [0, 44], sizes = [32, 1], strides = [1, 1]} : vector<32x64xi32> to vector<32x1xi32>
    %185 = vector.broadcast %184 : vector<32x1xi32> to vector<32x128xi32>
    %186 = arith.cmpi eq, %185, %6 : vector<32x128xi32>
    %187 = arith.ori %183, %186 : vector<32x128xi1>
    %188 = vector.extract_strided_slice %5 {offsets = [0, 45], sizes = [32, 1], strides = [1, 1]} : vector<32x64xi32> to vector<32x1xi32>
    %189 = vector.broadcast %188 : vector<32x1xi32> to vector<32x128xi32>
    %190 = arith.cmpi eq, %189, %6 : vector<32x128xi32>
    %191 = arith.ori %187, %190 : vector<32x128xi1>
    %192 = vector.extract_strided_slice %5 {offsets = [0, 46], sizes = [32, 1], strides = [1, 1]} : vector<32x64xi32> to vector<32x1xi32>
    %193 = vector.broadcast %192 : vector<32x1xi32> to vector<32x128xi32>
    %194 = arith.cmpi eq, %193, %6 : vector<32x128xi32>
    %195 = arith.ori %191, %194 : vector<32x128xi1>
    %196 = vector.extract_strided_slice %5 {offsets = [0, 47], sizes = [32, 1], strides = [1, 1]} : vector<32x64xi32> to vector<32x1xi32>
    %197 = vector.broadcast %196 : vector<32x1xi32> to vector<32x128xi32>
    %198 = arith.cmpi eq, %197, %6 : vector<32x128xi32>
    %199 = arith.ori %195, %198 : vector<32x128xi1>
    %200 = vector.extract_strided_slice %5 {offsets = [0, 48], sizes = [32, 1], strides = [1, 1]} : vector<32x64xi32> to vector<32x1xi32>
    %201 = vector.broadcast %200 : vector<32x1xi32> to vector<32x128xi32>
    %202 = arith.cmpi eq, %201, %6 : vector<32x128xi32>
    %203 = arith.ori %199, %202 : vector<32x128xi1>
    %204 = vector.extract_strided_slice %5 {offsets = [0, 49], sizes = [32, 1], strides = [1, 1]} : vector<32x64xi32> to vector<32x1xi32>
    %205 = vector.broadcast %204 : vector<32x1xi32> to vector<32x128xi32>
    %206 = arith.cmpi eq, %205, %6 : vector<32x128xi32>
    %207 = arith.ori %203, %206 : vector<32x128xi1>
    %208 = vector.extract_strided_slice %5 {offsets = [0, 50], sizes = [32, 1], strides = [1, 1]} : vector<32x64xi32> to vector<32x1xi32>
    %209 = vector.broadcast %208 : vector<32x1xi32> to vector<32x128xi32>
    %210 = arith.cmpi eq, %209, %6 : vector<32x128xi32>
    %211 = arith.ori %207, %210 : vector<32x128xi1>
    %212 = vector.extract_strided_slice %5 {offsets = [0, 51], sizes = [32, 1], strides = [1, 1]} : vector<32x64xi32> to vector<32x1xi32>
    %213 = vector.broadcast %212 : vector<32x1xi32> to vector<32x128xi32>
    %214 = arith.cmpi eq, %213, %6 : vector<32x128xi32>
    %215 = arith.ori %211, %214 : vector<32x128xi1>
    %216 = vector.extract_strided_slice %5 {offsets = [0, 52], sizes = [32, 1], strides = [1, 1]} : vector<32x64xi32> to vector<32x1xi32>
    %217 = vector.broadcast %216 : vector<32x1xi32> to vector<32x128xi32>
    %218 = arith.cmpi eq, %217, %6 : vector<32x128xi32>
    %219 = arith.ori %215, %218 : vector<32x128xi1>
    %220 = vector.extract_strided_slice %5 {offsets = [0, 53], sizes = [32, 1], strides = [1, 1]} : vector<32x64xi32> to vector<32x1xi32>
    %221 = vector.broadcast %220 : vector<32x1xi32> to vector<32x128xi32>
    %222 = arith.cmpi eq, %221, %6 : vector<32x128xi32>
    %223 = arith.ori %219, %222 : vector<32x128xi1>
    %224 = vector.extract_strided_slice %5 {offsets = [0, 54], sizes = [32, 1], strides = [1, 1]} : vector<32x64xi32> to vector<32x1xi32>
    %225 = vector.broadcast %224 : vector<32x1xi32> to vector<32x128xi32>
    %226 = arith.cmpi eq, %225, %6 : vector<32x128xi32>
    %227 = arith.ori %223, %226 : vector<32x128xi1>
    %228 = vector.extract_strided_slice %5 {offsets = [0, 55], sizes = [32, 1], strides = [1, 1]} : vector<32x64xi32> to vector<32x1xi32>
    %229 = vector.broadcast %228 : vector<32x1xi32> to vector<32x128xi32>
    %230 = arith.cmpi eq, %229, %6 : vector<32x128xi32>
    %231 = arith.ori %227, %230 : vector<32x128xi1>
    %232 = vector.extract_strided_slice %5 {offsets = [0, 56], sizes = [32, 1], strides = [1, 1]} : vector<32x64xi32> to vector<32x1xi32>
    %233 = vector.broadcast %232 : vector<32x1xi32> to vector<32x128xi32>
    %234 = arith.cmpi eq, %233, %6 : vector<32x128xi32>
    %235 = arith.ori %231, %234 : vector<32x128xi1>
    %236 = vector.extract_strided_slice %5 {offsets = [0, 57], sizes = [32, 1], strides = [1, 1]} : vector<32x64xi32> to vector<32x1xi32>
    %237 = vector.broadcast %236 : vector<32x1xi32> to vector<32x128xi32>
    %238 = arith.cmpi eq, %237, %6 : vector<32x128xi32>
    %239 = arith.ori %235, %238 : vector<32x128xi1>
    %240 = vector.extract_strided_slice %5 {offsets = [0, 58], sizes = [32, 1], strides = [1, 1]} : vector<32x64xi32> to vector<32x1xi32>
    %241 = vector.broadcast %240 : vector<32x1xi32> to vector<32x128xi32>
    %242 = arith.cmpi eq, %241, %6 : vector<32x128xi32>
    %243 = arith.ori %239, %242 : vector<32x128xi1>
    %244 = vector.extract_strided_slice %5 {offsets = [0, 59], sizes = [32, 1], strides = [1, 1]} : vector<32x64xi32> to vector<32x1xi32>
    %245 = vector.broadcast %244 : vector<32x1xi32> to vector<32x128xi32>
    %246 = arith.cmpi eq, %245, %6 : vector<32x128xi32>
    %247 = arith.ori %243, %246 : vector<32x128xi1>
    %248 = vector.extract_strided_slice %5 {offsets = [0, 60], sizes = [32, 1], strides = [1, 1]} : vector<32x64xi32> to vector<32x1xi32>
    %249 = vector.broadcast %248 : vector<32x1xi32> to vector<32x128xi32>
    %250 = arith.cmpi eq, %249, %6 : vector<32x128xi32>
    %251 = arith.ori %247, %250 : vector<32x128xi1>
    %252 = vector.extract_strided_slice %5 {offsets = [0, 61], sizes = [32, 1], strides = [1, 1]} : vector<32x64xi32> to vector<32x1xi32>
    %253 = vector.broadcast %252 : vector<32x1xi32> to vector<32x128xi32>
    %254 = arith.cmpi eq, %253, %6 : vector<32x128xi32>
    %255 = arith.ori %251, %254 : vector<32x128xi1>
    %256 = vector.extract_strided_slice %5 {offsets = [0, 62], sizes = [32, 1], strides = [1, 1]} : vector<32x64xi32> to vector<32x1xi32>
    %257 = vector.broadcast %256 : vector<32x1xi32> to vector<32x128xi32>
    %258 = arith.cmpi eq, %257, %6 : vector<32x128xi32>
    %259 = arith.ori %255, %258 : vector<32x128xi1>
    %260 = vector.extract_strided_slice %5 {offsets = [0, 63], sizes = [32, 1], strides = [1, 1]} : vector<32x64xi32> to vector<32x1xi32>
    %261 = vector.broadcast %260 : vector<32x1xi32> to vector<32x128xi32>
    %262 = arith.cmpi eq, %261, %6 : vector<32x128xi32>
    %263 = arith.ori %259, %262 : vector<32x128xi1>
    %264 = arith.extui %263 : vector<32x128xi1> to vector<32x128xi32>
    %265 = arith.sitofp %264 : vector<32x128xi32> to vector<32x128xf32>
    %c1_i32 = arith.constant 1 : i32
    %266 = arith.muli %arg0, %c1_i32 : i32
    %267 = arith.addi %266, %arg1 : i32
    %c32_i32 = arith.constant 32 : i32
    %268 = arith.muli %267, %c32_i32 : i32
    %269 = tpu.iota {dimensions = array<i32: 0>} : vector<32x1xi32>
    %270 = vector.broadcast %268 : i32 to vector<32x1xi32>
    %271 = arith.addi %270, %269 : vector<32x1xi32>
    %c8_i32 = arith.constant 8 : i32
    %272 = vector.broadcast %c8_i32 : i32 to vector<32x1xi32>
    %273 = arith.cmpi slt, %271, %272 : vector<32x1xi32>
    %274 = arith.extui %273 : vector<32x1xi1> to vector<32x1xi32>
    %275 = arith.sitofp %274 : vector<32x1xi32> to vector<32x1xf32>
    %c0_4 = arith.constant 0 : index
    %c0_5 = arith.constant 0 : index
    %276 = vector.load %arg6[%c0_4, %c0_5] : memref<32x128xf32, #tpu.memory_space<vmem>>, vector<32x128xf32>
    %c0_6 = arith.constant 0 : index
    %c0_7 = arith.constant 0 : index
    %277 = vector.load %arg4[%c0_6, %c0_7] : memref<1x128xf32, #tpu.memory_space<vmem>>, vector<1x128xf32>
    %278 = math.absf %3 : vector<32x128xf32>
    %cst = arith.constant 0.000000e+00 : f32
    %279 = vector.broadcast %cst : f32 to vector<32x128xf32>
    %280 = arith.subf %279, %278 : vector<32x128xf32>
    %281 = math.exp %280 : vector<32x128xf32>
    %cst_8 = arith.constant 1.000000e+00 : f32
    %282 = vector.broadcast %cst_8 : f32 to vector<32x128xf32>
    %283 = arith.addf %282, %281 : vector<32x128xf32>
    %284 = math.log %283 : vector<32x128xf32>
    %cst_9 = arith.constant 0.000000e+00 : f32
    %285 = vector.broadcast %cst_9 : f32 to vector<32x128xf32>
    %286 = arith.maximumf %3, %285 : vector<32x128xf32>
    %287 = arith.addf %286, %284 : vector<32x128xf32>
    %cst_10 = arith.constant 1.000000e+02 : f32
    %288 = vector.broadcast %cst_10 : f32 to vector<32x128xf32>
    %289 = arith.minimumf %287, %288 : vector<32x128xf32>
    %cst_11 = arith.constant 0.000000e+00 : f32
    %290 = vector.broadcast %cst_11 : f32 to vector<32x128xf32>
    %291 = arith.subf %290, %3 : vector<32x128xf32>
    %cst_12 = arith.constant 0.000000e+00 : f32
    %292 = vector.broadcast %cst_12 : f32 to vector<32x128xf32>
    %293 = arith.maximumf %291, %292 : vector<32x128xf32>
    %294 = arith.addf %293, %284 : vector<32x128xf32>
    %cst_13 = arith.constant 1.000000e+02 : f32
    %295 = vector.broadcast %cst_13 : f32 to vector<32x128xf32>
    %296 = arith.minimumf %294, %295 : vector<32x128xf32>
    %297 = arith.mulf %265, %296 : vector<32x128xf32>
    %cst_14 = arith.constant 1.000000e+00 : f32
    %298 = vector.broadcast %cst_14 : f32 to vector<32x128xf32>
    %299 = arith.subf %298, %265 : vector<32x128xf32>
    %300 = arith.mulf %299, %289 : vector<32x128xf32>
    %301 = arith.addf %297, %300 : vector<32x128xf32>
    %302 = vector.broadcast %277 : vector<1x128xf32> to vector<32x128xf32>
    %303 = arith.mulf %301, %302 : vector<32x128xf32>
    %304 = vector.broadcast %275 : vector<32x1xf32> to vector<32x128xf32>
    %305 = arith.mulf %303, %304 : vector<32x128xf32>
    %306 = arith.addf %276, %305 : vector<32x128xf32>
    %c0_15 = arith.constant 0 : index
    %c0_16 = arith.constant 0 : index
    %307 = vector.load %arg6[%c0_15, %c0_16] : memref<32x128xf32, #tpu.memory_space<vmem>>, vector<32x128xf32>
    tpu.vector_store %arg6[%c0_15, %c0_16], %306 {strides = array<i32>} : memref<32x128xf32, #tpu.memory_space<vmem>>, vector<32x128xf32>,
    %c0_i32_17 = arith.constant 0 : i32
    %308 = arith.cmpi eq, %arg1, %c0_i32_17 : i32
    %309 = arith.extui %308 : i1 to i32
    %c0_i32_18 = arith.constant 0 : i32
    %310 = arith.cmpi ne, %309, %c0_i32_18 : i32
    scf.if %310 {
      %c0_19 = arith.constant 0 : index
      %c0_20 = arith.constant 0 : index
      %311 = vector.load %arg6[%c0_19, %c0_20] : memref<32x128xf32, #tpu.memory_space<vmem>>, vector<32x128xf32>
      %cst_21 = arith.constant dense<0.000000e+00> : vector<128xf32>
      %312 = vector.multi_reduction <add>, %311, %cst_21 [0] : vector<32x128xf32> to vector<128xf32>
      %313 = vector.shape_cast %312 : vector<128xf32> to vector<1x128xf32>
      %314 = tpu.iota {dimensions = array<i32: 0>} : vector<8x128xi32>
      %c0_i32_22 = arith.constant 0 : i32
      %315 = vector.broadcast %c0_i32_22 : i32 to vector<8x128xi32>
      %316 = arith.cmpi eq, %314, %315 : vector<8x128xi32>
      %cst_23 = arith.constant 0.000000e+00 : f32
      %317 = vector.shape_cast %313 : vector<1x128xf32> to vector<1x128xf32>
      %318 = vector.broadcast %317 : vector<1x128xf32> to vector<8x128xf32>
      %319 = vector.broadcast %cst_23 : f32 to vector<8x128xf32>
      %320 = arith.select %316, %318, %319 : vector<8x128xi1>, vector<8x128xf32>
      %c0_24 = arith.constant 0 : index
      %c0_25 = arith.constant 0 : index
      %321 = vector.load %arg5[%c0_24, %c0_25] : memref<8x128xf32, #tpu.memory_space<vmem>>, vector<8x128xf32>
      tpu.vector_store %arg5[%c0_24, %c0_25], %320 {strides = array<i32>} : memref<8x128xf32, #tpu.memory_space<vmem>>, vector<8x128xf32>,
    } else {
    }
    return
  }
  func.func @transform_0(%arg0: i32, %arg1: i32) -> (i32, i32) {
    %c1_i32 = arith.constant 1 : i32
    %0 = arith.muli %arg0, %c1_i32 : i32
    %1 = arith.addi %0, %arg1 : i32
    %c0_i32 = arith.constant 0 : i32
    %c0_i32_0 = arith.constant 0 : i32
    return %1, %c0_i32 : i32, i32
  }
  func.func @transform_1(%arg0: i32, %arg1: i32) -> (i32, i32) {
    %c1_i32 = arith.constant 1 : i32
    %0 = arith.muli %arg0, %c1_i32 : i32
    %1 = arith.addi %0, %arg1 : i32
    %c0_i32 = arith.constant 0 : i32
    %c0_i32_0 = arith.constant 0 : i32
    return %1, %c0_i32 : i32, i32
  }
  func.func @transform_2(%arg0: i32, %arg1: i32) -> (i32, i32) {
    %c0_i32 = arith.constant 0 : i32
    %c0_i32_0 = arith.constant 0 : i32
    %c0_i32_1 = arith.constant 0 : i32
    return %c0_i32, %c0_i32_0 : i32, i32
  }
  func.func @transform_3(%arg0: i32, %arg1: i32) -> (i32, i32) {
    %c0_i32 = arith.constant 0 : i32
    %c0_i32_0 = arith.constant 0 : i32
    return %arg0, %c0_i32 : i32, i32
  }
}

</mosaic_0001>

<bundles_post_ra>
// kernel: tpu_custom_call.1
= control target key start
LH: loop header
LB: loop body
LE: loop exit
PB: predicated region body
PF: predicated region fallthrough
CT: control target
= control target key end

     0   :  { %8 = vsyncpa [#allocation4], 0  ;;  %s3349_s0 = inlined_call_operand.hbm [shape: f32[32,128], index: 0, kind: input, shape index: {}]   ;;  %s3350_s1 = inlined_call_operand.hbm [shape: s8[32,64], index: 1, kind: input, shape index: {}]   ;;  %s3351_s2 = inlined_call_operand.vmem [shape: f32[1,128], index: 2, kind: input, shape index: {}]   ;;  %s3352_s3 = inlined_call_operand.hbm [shape: f32[8,128], index: 3, kind: output, shape index: {}]  }
   0x1   :  { %9 = vsyncpa [#allocation7], 0 }
   0x2   :  { %10 = vsyncpa [#allocation5], 0  ;;  %s1809_s12 = smov [#allocation3]   ;;  %s1737_s16 = scalar_lea.hbm %s3349_s0, 512 }
   0x3   :  { %s20_s13 = sshll.u32 %s1809_s12, 4  ;;  %p1738_p0 = scmp.ne.s32.totalorder %s3349_s0, %s1737_s16  ;;  %s21_s13 = int_to_ptr.vmem [resolvable:$true] %s20_s13 }
   0x4   :  { %p1741_p1 = scmp.lt.u32.totalorder %s1737_s16, %s3349_s0 }
   0x6   :  { %p1743_p2 = pnand %p1741_p1, %p1738_p0 }
   0x8   :  { %1746 = shalt.err (!%p1743_p2)
}
   0x9   :  { %s1747_s21 = scalar_lea.vmem %s21_s13, 512  ;;  %p1752_p4 = scmp.lt.s32.totalorder %s21_s13, %s21_s13 }
   0xa   :  { %p1748_p3 = scmp.ne.s32.totalorder %s21_s13, %s1747_s21  ;;  %p1753_p5 = scmp.lt.s32.totalorder %s1747_s21, %s1747_s21 }
   0xc   :  { %p1754_p6 = por %p1753_p5, %p1752_p4 }
   0xe   :  { %p1755_p7 = pnand %p1754_p6, %p1748_p3 }
  0x10   :  { %1758 = shalt.err (!%p1755_p7)
}
  0x11   :  { %s1810_s22 = smov 128   ;;  %s1811_s23 = smov 8  }
  0x12   :  { %26 = dma.hbm_to_vmem [thread:$0]  %s3349_s0, 512, %s21_s13, [#allocation4], %s1810_s22, %s1810_s22, %s1811_s23  }
  0x13   :  { %s1812_s26 = smov [#allocation6]   ;;  %s1759_s30 = scalar_lea.hbm %s3350_s1, 128 }
  0x14   :  { %s36_s27 = sshll.u32 %s1812_s26, 4  ;;  %p1760_p8 = scmp.ne.s32.totalorder %s3350_s1, %s1759_s30  ;;  %s37_s27 = int_to_ptr.vmem [resolvable:$true] %s36_s27 }
  0x15   :  { %p1763_p9 = scmp.lt.u32.totalorder %s1759_s30, %s3350_s1 }
  0x17   :  { %p1765_p10 = pnand %p1763_p9, %p1760_p8 }
  0x19   :  { %1768 = shalt.err (!%p1765_p10)
}
  0x1a   :  { %s1769_s8 = scalar_lea.vmem %s37_s27, 128  ;;  %p1774_p12 = scmp.lt.s32.totalorder %s37_s27, %s37_s27 }
  0x1b   :  { %p1770_p11 = scmp.ne.s32.totalorder %s37_s27, %s1769_s8  ;;  %p1775_p13 = scmp.lt.s32.totalorder %s1769_s8, %s1769_s8 }
  0x1d   :  { %p1776_p0 = por %p1775_p13, %p1774_p12 }
  0x1f   :  { %p1777_p1 = pnand %p1776_p0, %p1770_p11 }
  0x21   :  { %1780 = shalt.err (!%p1777_p1)
}
  0x22   :  { %39 = dma.hbm_to_vmem [thread:$0]  %s3350_s1, 128, %s37_s27, [#allocation7]  }
  0x23   :  { %1803 = dma.done.wait [#allocation4], 512  }
  0x24   :  { %1804 = vsyncadd [#allocation4], 4294966784 }
  0x25   :  { %1805 = dma.done.wait [#allocation7], 128  }
  0x26   :  { %1806 = vsyncadd [#allocation7], 4294967168  ;;  %v1813_v0 = vmov 0   ;;  %v64_v1 = vld [vmem:[#allocation6] sm:$0xff]  ;;  %v1814_v6 = vmov 1   ;;  %v1815_v7 = vmov 2  }
  0x27   :  { %1589 = vset.pattern.permute.xlu1 %v1813_v0  ;;  %1588 = vset.pattern.permute.xlu0 %v1813_v0  ;;  %v1923_v2 = vunpack.c.0.s8 %v64_v1  ;;  %v1925_v3 = vunpack.c.2.s8 %v64_v1  ;;  %v1927_v4 = vunpack.c.1.s8 %v64_v1  ;;  %v1929_v5 = vunpack.c.3.s8 %v64_v1 }
  0x28   :  { %v1816_v8 = vmov 3   ;;  %v1817_v9 = vmov 4   ;;  %v1818_v10 = vmov 5   ;;  %v1819_v11 = vmov 6  }
  0x29   :  { %78 = vperm.xlu1 %1589, %v1925_v3   ;;  %72 = vperm.xlu0 %1588, %v1923_v2   ;;  %v1820_v12 = vmov 7   ;;  %v1821_v13 = vmov 8   ;;  %v1822_v14 = vmov 9   ;;  %v1823_v15 = vmov 10  }
  0x2a   :  { %v1824_v16 = vmov 11   ;;  %v1825_v17 = vmov 12   ;;  %v1826_v18 = vmov 13   ;;  %v1827_v19 = vmov 14  }
  0x2b   :  { %v1828_v20 = vmov 15   ;;  %v1829_v21 = vmov 16   ;;  %v1830_v22 = vmov 17   ;;  %v1831_v24 = vmov 18  }
  0x2c   :  { %v1832_v26 = vmov 19   ;;  %v1833_v29 = vmov 20   ;;  %v1834_v31 = vmov 21   ;;  %v1835_v34 = vmov 22  }
  0x2d   :  { %81 = vperm.xlu1 %1589, %v1929_v5   ;;  %75 = vperm.xlu0 %1588, %v1927_v4   ;;  %v1836_v37 = vmov 23   ;;  %v1837_v40 = vmov 24   ;;  %v1838_v42 = vmov 25   ;;  %v1839_v45 = vmov 26  }
  0x2e   :  { %v1840_v47 = vmov 27   ;;  %v1841_v50 = vmov 28   ;;  %v3363_v52 = vmov 29   ;;  %v3362_v55 = vmov 30  }
  0x2f   :  { %v3361_v57 = vmov 31   ;;  %v3360_v62 = vmov 32   ;;  %v3359_v0 = vmov 33  }
  0x31   :  { %1591 = vset.pattern.permute.xlu1 %v1814_v6  ;;  %1590 = vset.pattern.permute.xlu0 %v1814_v6 }
  0x32   :  { %91 = vperm.xlu1 %1591, %v1927_v4   ;;  %88 = vperm.xlu0 %1590, %v1923_v2  }
  0x36   :  { %94 = vperm.xlu1 %1591, %v1925_v3   ;;  %97 = vperm.xlu0 %1590, %v1929_v5  }
  0x3a   :  { %1592 = vset.pattern.permute.xlu1 %v1815_v7  ;;  %1593 = vset.pattern.permute.xlu0 %v1815_v7 }
  0x3b   :  { %108 = vperm.xlu1 %1592, %v1923_v2   ;;  %111 = vperm.xlu0 %1593, %v1927_v4  }
  0x3f   :  { %114 = vperm.xlu1 %1592, %v1925_v3   ;;  %1594 = vset.pattern.permute.xlu0 %v1816_v8 }
  0x40   :  { %128 = vperm.xlu0 %1594, %v1923_v2  }
  0x43   :  { %117 = vperm.xlu1 %1592, %v1929_v5  }
  0x44   :  { %137 = vperm.xlu0 %1594, %v1929_v5  }
  0x47   :  { %1595 = vset.pattern.permute.xlu1 %v1816_v8 }
  0x48   :  { %131 = vperm.xlu1 %1595, %v1927_v4   ;;  %1597 = vset.pattern.permute.xlu0 %v1817_v9 }
  0x49   :  { %151 = vperm.xlu0 %1597, %v1927_v4  }
  0x4c   :  { %134 = vperm.xlu1 %1595, %v1925_v3  }
  0x4d   :  { %1598 = vset.pattern.permute.xlu0 %v1818_v10 }
  0x4e   :  { %168 = vperm.xlu0 %1598, %v1923_v2  }
  0x50   :  { %1596 = vset.pattern.permute.xlu1 %v1817_v9 }
  0x51   :  { %148 = vperm.xlu1 %1596, %v1923_v2  }
  0x52   :  { %177 = vperm.xlu0 %1598, %v1929_v5  }
  0x55   :  { %154 = vperm.xlu1 %1596, %v1925_v3  }
  0x56   :  { %1601 = vset.pattern.permute.xlu0 %v1819_v11 }
  0x57   :  { %191 = vperm.xlu0 %1601, %v1927_v4  }
  0x59   :  { %157 = vperm.xlu1 %1596, %v1929_v5  }
  0x5b   :  { %1602 = vset.pattern.permute.xlu0 %v1820_v12 }
  0x5c   :  { %208 = vperm.xlu0 %1602, %v1923_v2  }
  0x5d   :  { %1599 = vset.pattern.permute.xlu1 %v1818_v10  ;;  %v3357_v10 = vmov 34  }
  0x5e   :  { %171 = vperm.xlu1 %1599, %v1927_v4  }
  0x60   :  { %217 = vperm.xlu0 %1602, %v1929_v5  }
  0x62   :  { %174 = vperm.xlu1 %1599, %v1925_v3  }
  0x64   :  { %1605 = vset.pattern.permute.xlu0 %v1821_v13 }
  0x65   :  { %231 = vperm.xlu0 %1605, %v1927_v4  }
  0x66   :  { %1600 = vset.pattern.permute.xlu1 %v1819_v11 }
  0x67   :  { %188 = vperm.xlu1 %1600, %v1923_v2  }
  0x69   :  { %1606 = vset.pattern.permute.xlu0 %v1822_v14 }
  0x6a   :  { %248 = vperm.xlu0 %1606, %v1923_v2  }
  0x6b   :  { %194 = vperm.xlu1 %1600, %v1925_v3  }
  0x6e   :  { %257 = vperm.xlu0 %1606, %v1929_v5  }
  0x6f   :  { %197 = vperm.xlu1 %1600, %v1929_v5  }
  0x72   :  { %1609 = vset.pattern.permute.xlu0 %v1823_v15 }
  0x73   :  { %1603 = vset.pattern.permute.xlu1 %v1820_v12  ;;  %271 = vperm.xlu0 %1609, %v1927_v4  }
  0x74   :  { %211 = vperm.xlu1 %1603, %v1927_v4  }
  0x77   :  { %1610 = vset.pattern.permute.xlu0 %v1824_v16 }
  0x78   :  { %214 = vperm.xlu1 %1603, %v1925_v3   ;;  %288 = vperm.xlu0 %1610, %v1923_v2  }
  0x7c   :  { %1604 = vset.pattern.permute.xlu1 %v1821_v13  ;;  %297 = vperm.xlu0 %1610, %v1929_v5   ;;  %v3356_v13 = vmov 35  }
  0x7d   :  { %228 = vperm.xlu1 %1604, %v1923_v2  }
  0x80   :  { %1613 = vset.pattern.permute.xlu0 %v1825_v17 }
  0x81   :  { %234 = vperm.xlu1 %1604, %v1925_v3   ;;  %311 = vperm.xlu0 %1613, %v1927_v4  }
  0x85   :  { %237 = vperm.xlu1 %1604, %v1929_v5   ;;  %1614 = vset.pattern.permute.xlu0 %v1826_v18 }
  0x86   :  { %328 = vperm.xlu0 %1614, %v1923_v2  }
  0x89   :  { %1607 = vset.pattern.permute.xlu1 %v1822_v14 }
  0x8a   :  { %251 = vperm.xlu1 %1607, %v1927_v4   ;;  %337 = vperm.xlu0 %1614, %v1929_v5  }
  0x8e   :  { %254 = vperm.xlu1 %1607, %v1925_v3   ;;  %1617 = vset.pattern.permute.xlu0 %v1827_v19 }
  0x8f   :  { %351 = vperm.xlu0 %1617, %v1927_v4  }
  0x92   :  { %1608 = vset.pattern.permute.xlu1 %v1823_v15 }
  0x93   :  { %268 = vperm.xlu1 %1608, %v1923_v2   ;;  %1618 = vset.pattern.permute.xlu0 %v1828_v20 }
  0x94   :  { %368 = vperm.xlu0 %1618, %v1923_v2  }
  0x97   :  { %274 = vperm.xlu1 %1608, %v1925_v3  }
  0x98   :  { %377 = vperm.xlu0 %1618, %v1929_v5  }
  0x9b   :  { %277 = vperm.xlu1 %1608, %v1929_v5  }
  0x9c   :  { %1621 = vset.pattern.permute.xlu0 %v1829_v21 }
  0x9d   :  { %391 = vperm.xlu0 %1621, %v1927_v4  }
  0x9f   :  { %1611 = vset.pattern.permute.xlu1 %v1824_v16 }
  0xa0   :  { %291 = vperm.xlu1 %1611, %v1927_v4  }
  0xa1   :  { %1622 = vset.pattern.permute.xlu0 %v1830_v22 }
  0xa2   :  { %408 = vperm.xlu0 %1622, %v1923_v2  }
  0xa4   :  { %294 = vperm.xlu1 %1611, %v1925_v3  }
  0xa6   :  { %417 = vperm.xlu0 %1622, %v1929_v5  }
  0xa8   :  { %v1989_v23 = vpop.permute.xlu1 %78  ;;  %1612 = vset.pattern.permute.xlu1 %v1825_v17  ;;  %v2093_v59 = vpop.permute.xlu0 %72  ;;  %v3354_v17 = vmov 36  }
  0xa9   :  { %3373 = vst [vmem:[#allocation12_spill] sm:$0xff] %v1989_v23  ;;  %308 = vperm.xlu1 %1612, %v1923_v2  }
  0xaa   :  { %1625 = vset.pattern.permute.xlu0 %v1831_v24 }
  0xab   :  { %431 = vperm.xlu0 %1625, %v1927_v4  }
  0xac   :  { %v1994_v25 = vpop.permute.xlu1 %81  ;;  %v2099_v61 = vpop.permute.xlu0 %75 }
  0xad   :  { %314 = vperm.xlu1 %1612, %v1925_v3  }
  0xaf   :  { %1626 = vset.pattern.permute.xlu0 %v1832_v26 }
  0xb0   :  { %448 = vperm.xlu0 %1626, %v1923_v2  }
  0xb1   :  { %v1999_v27 = vpop.permute.xlu1 %91  ;;  %317 = vperm.xlu1 %1612, %v1929_v5   ;;  %v2108_v1 = vpop.permute.xlu0 %88 }
  0xb4   :  { %457 = vperm.xlu0 %1626, %v1929_v5  }
  0xb5   :  { %v2003_v28 = vpop.permute.xlu1 %94  ;;  %1615 = vset.pattern.permute.xlu1 %v1826_v18  ;;  %v2119_v8 = vpop.permute.xlu0 %97 }
  0xb6   :  { %3374 = vst [vmem:[#allocation13_spill] sm:$0xff] %v2003_v28  ;;  %331 = vperm.xlu1 %1615, %v1927_v4   ;;  %v3369_v28 = vmov 45  }
  0xb8   :  { %1629 = vset.pattern.permute.xlu0 %v1833_v29 }
  0xb9   :  { %471 = vperm.xlu0 %1629, %v1927_v4  }
  0xba   :  { %334 = vperm.xlu1 %1615, %v1925_v3   ;;  %v2009_v30 = vpop.permute.xlu1 %108  ;;  %v2126_v11 = vpop.permute.xlu0 %111 }
  0xbd   :  { %1630 = vset.pattern.permute.xlu0 %v1834_v31 }
  0xbe   :  { %1616 = vset.pattern.permute.xlu1 %v1827_v19  ;;  %v2012_v32 = vpop.permute.xlu1 %114  ;;  %488 = vperm.xlu0 %1630, %v1923_v2  }
  0xbf   :  { %3375 = vst [vmem:[#allocation14_spill] sm:$0xff] %v2012_v32  ;;  %348 = vperm.xlu1 %1616, %v1923_v2   ;;  %v2136_v15 = vpop.permute.xlu0 %128  ;;  %v3400_v32 = vmov 32  }
  0xc2   :  { %v2016_v33 = vpop.permute.xlu1 %117  ;;  %497 = vperm.xlu0 %1630, %v1929_v5  }
  0xc3   :  { %354 = vperm.xlu1 %1616, %v1925_v3   ;;  %v2144_v18 = vpop.permute.xlu0 %137 }
  0xc6   :  { %1633 = vset.pattern.permute.xlu0 %v1835_v34 }
  0xc7   :  { %357 = vperm.xlu1 %1616, %v1929_v5   ;;  %v2022_v35 = vpop.permute.xlu1 %131  ;;  %511 = vperm.xlu0 %1633, %v1927_v4  }
  0xcb   :  { %1619 = vset.pattern.permute.xlu1 %v1828_v20  ;;  %v2025_v36 = vpop.permute.xlu1 %134  ;;  %1634 = vset.pattern.permute.xlu0 %v1836_v37 }
  0xcc   :  { %3376 = vst [vmem:[#allocation15_spill] sm:$0xff] %v2025_v36  ;;  %371 = vperm.xlu1 %1619, %v1927_v4   ;;  %528 = vperm.xlu0 %1634, %v1923_v2  }
  0xd0   :  { %374 = vperm.xlu1 %1619, %v1925_v3   ;;  %v2031_v38 = vpop.permute.xlu1 %148  ;;  %537 = vperm.xlu0 %1634, %v1929_v5  }
  0xd4   :  { %1620 = vset.pattern.permute.xlu1 %v1829_v21  ;;  %v2034_v39 = vpop.permute.xlu1 %154  ;;  %1637 = vset.pattern.permute.xlu0 %v1837_v40  ;;  %v3353_v21 = vmov 37  }
  0xd5   :  { %3377 = vst [vmem:[#allocation16_spill] sm:$0xff] %v2034_v39  ;;  %388 = vperm.xlu1 %1620, %v1923_v2   ;;  %551 = vperm.xlu0 %1637, %v1927_v4   ;;  %v3368_v39 = vmov 44  }
  0xd8   :  { %v2039_v41 = vpop.permute.xlu1 %157 }
  0xd9   :  { %394 = vperm.xlu1 %1620, %v1925_v3   ;;  %1638 = vset.pattern.permute.xlu0 %v1838_v42 }
  0xda   :  { %568 = vperm.xlu0 %1638, %v1923_v2  }
  0xdd   :  { %397 = vperm.xlu1 %1620, %v1929_v5   ;;  %v2045_v43 = vpop.permute.xlu1 %171 }
  0xde   :  { %577 = vperm.xlu0 %1638, %v1929_v5  }
  0xe1   :  { %1623 = vset.pattern.permute.xlu1 %v1830_v22  ;;  %v2049_v44 = vpop.permute.xlu1 %174  ;;  %v2155_v22 = vpop.permute.xlu0 %151 }
  0xe2   :  { %3378 = vst [vmem:[#allocation17_spill] sm:$0xff] %v2049_v44  ;;  %411 = vperm.xlu1 %1623, %v1927_v4   ;;  %1641 = vset.pattern.permute.xlu0 %v1839_v45 }
  0xe3   :  { %591 = vperm.xlu0 %1641, %v1927_v4  }
  0xe6   :  { %414 = vperm.xlu1 %1623, %v1925_v3   ;;  %v2055_v46 = vpop.permute.xlu1 %188 }
  0xe7   :  { %1642 = vset.pattern.permute.xlu0 %v1840_v47 }
  0xe8   :  { %608 = vperm.xlu0 %1642, %v1923_v2  }
  0xea   :  { %1624 = vset.pattern.permute.xlu1 %v1831_v24  ;;  %v2060_v48 = vpop.permute.xlu1 %194 }
  0xeb   :  { %3379 = vst [vmem:[#allocation18_spill] sm:$0xff] %v2060_v48  ;;  %428 = vperm.xlu1 %1624, %v1923_v2  }
  0xec   :  { %617 = vperm.xlu0 %1642, %v1929_v5  }
  0xee   :  { %v2064_v49 = vpop.permute.xlu1 %197 }
  0xef   :  { %434 = vperm.xlu1 %1624, %v1925_v3  }
  0xf0   :  { %1645 = vset.pattern.permute.xlu0 %v1841_v50 }
  0xf1   :  { %631 = vperm.xlu0 %1645, %v1927_v4  }
  0xf3   :  { %437 = vperm.xlu1 %1624, %v1929_v5   ;;  %v2070_v51 = vpop.permute.xlu1 %211 }
  0xf5   :  { %1646 = vset.pattern.permute.xlu0 %v3363_v52 }
  0xf6   :  { %648 = vperm.xlu0 %1646, %v1923_v2  }
  0xf7   :  { %1627 = vset.pattern.permute.xlu1 %v1832_v26  ;;  %v2075_v53 = vpop.permute.xlu1 %214  ;;  %v2161_v26 = vpop.permute.xlu0 %168 }
  0xf8   :  { %3380 = vst [vmem:[#allocation19_spill] sm:$0xff] %v2075_v53  ;;  %451 = vperm.xlu1 %1627, %v1927_v4  }
  0xfa   :  { %657 = vperm.xlu0 %1646, %v1929_v5  }
  0xfc   :  { %454 = vperm.xlu1 %1627, %v1925_v3   ;;  %v2080_v54 = vpop.permute.xlu1 %228 }
  0xfe   :  { %1649 = vset.pattern.permute.xlu0 %v3362_v55 }
  0xff   :  { %671 = vperm.xlu0 %1649, %v1927_v4  }
 0x100   :  { %1628 = vset.pattern.permute.xlu1 %v1833_v29  ;;  %v2085_v56 = vpop.permute.xlu1 %234 }
 0x101   :  { %3381 = vst [vmem:[#allocation20_spill] sm:$0xff] %v2085_v56  ;;  %468 = vperm.xlu1 %1628, %v1923_v2   ;;  %v3367_v56 = vmov 43  }
 0x103   :  { %1650 = vset.pattern.permute.xlu0 %v3361_v57 }
 0x104   :  { %v2089_v58 = vpop.permute.xlu1 %237  ;;  %688 = vperm.xlu0 %1650, %v1923_v2  }
 0x105   :  { %474 = vperm.xlu1 %1628, %v1925_v3  }
 0x108   :  { %697 = vperm.xlu0 %1650, %v1929_v5  }
 0x109   :  { %477 = vperm.xlu1 %1628, %v1929_v5   ;;  %v2097_v60 = vpop.permute.xlu1 %251 }
 0x10c   :  { %1653 = vset.pattern.permute.xlu0 %v3360_v62  ;;  %v3364_v62 = vmov 40  }
 0x10d   :  { %1631 = vset.pattern.permute.xlu1 %v1834_v31  ;;  %v2103_v63 = vpop.permute.xlu1 %254  ;;  %711 = vperm.xlu0 %1653, %v1927_v4  }
 0x10e   :  { %3382 = vst [vmem:[#allocation21_spill] sm:$0xff] %v2103_v63  ;;  %491 = vperm.xlu1 %1631, %v1927_v4  }
 0x111   :  { %1654 = vset.pattern.permute.xlu0 %v3359_v0 }
 0x112   :  { %494 = vperm.xlu1 %1631, %v1925_v3   ;;  %v2111_v6 = vpop.permute.xlu1 %268  ;;  %728 = vperm.xlu0 %1654, %v1923_v2  }
 0x116   :  { %1632 = vset.pattern.permute.xlu1 %v1835_v34  ;;  %v2115_v7 = vpop.permute.xlu1 %274  ;;  %737 = vperm.xlu0 %1654, %v1929_v5   ;;  %v3355_v34 = vmov 38  }
 0x117   :  { %3383 = vst [vmem:[#allocation22_spill] sm:$0xff] %v2115_v7  ;;  %508 = vperm.xlu1 %1632, %v1923_v2   ;;  %v3393_v7 = vmov 30  }
 0x11a   :  { %v2121_v9 = vpop.permute.xlu1 %277  ;;  %1657 = vset.pattern.permute.xlu0 %v3357_v10 }
 0x11b   :  { %514 = vperm.xlu1 %1632, %v1925_v3   ;;  %751 = vperm.xlu0 %1657, %v1927_v4  }
 0x11f   :  { %517 = vperm.xlu1 %1632, %v1929_v5   ;;  %v2129_v12 = vpop.permute.xlu1 %291  ;;  %1658 = vset.pattern.permute.xlu0 %v3356_v13 }
 0x120   :  { %768 = vperm.xlu0 %1658, %v1923_v2  }
 0x123   :  { %1635 = vset.pattern.permute.xlu1 %v1836_v37  ;;  %v2134_v14 = vpop.permute.xlu1 %294  ;;  %v2172_v37 = vpop.permute.xlu0 %177 }
 0x124   :  { %3384 = vst [vmem:[#allocation23_spill] sm:$0xff] %v2134_v14  ;;  %531 = vperm.xlu1 %1635, %v1927_v4   ;;  %777 = vperm.xlu0 %1658, %v1929_v5   ;;  %v3366_v14 = vmov 42  }
 0x128   :  { %534 = vperm.xlu1 %1635, %v1925_v3   ;;  %v2141_v16 = vpop.permute.xlu1 %308  ;;  %1661 = vset.pattern.permute.xlu0 %v3354_v17  ;;  %v3358_v17 = vmov 39  }
 0x129   :  { %791 = vperm.xlu0 %1661, %v1927_v4  }
 0x12c   :  { %1636 = vset.pattern.permute.xlu1 %v1837_v40  ;;  %v2148_v19 = vpop.permute.xlu1 %314 }
 0x12d   :  { %3385 = vst [vmem:[#allocation24_spill] sm:$0xff] %v2148_v19  ;;  %548 = vperm.xlu1 %1636, %v1923_v2   ;;  %1662 = vset.pattern.permute.xlu0 %v3353_v21  ;;  %v2181_v21 = vpop.permute.xlu0 %191 }
 0x12e   :  { %808 = vperm.xlu0 %1662, %v1923_v2  }
 0x130   :  { %v2151_v20 = vpop.permute.xlu1 %317 }
 0x131   :  { %554 = vperm.xlu1 %1636, %v1925_v3  }
 0x132   :  { %817 = vperm.xlu0 %1662, %v1929_v5  }
 0x135   :  { %557 = vperm.xlu1 %1636, %v1929_v5   ;;  %v2159_v24 = vpop.permute.xlu1 %331 }
 0x136   :  { %1665 = vset.pattern.permute.xlu0 %v3355_v34  ;;  %v2186_v34 = vpop.permute.xlu0 %208 }
 0x137   :  { %831 = vperm.xlu0 %1665, %v1927_v4  }
 0x139   :  { %1639 = vset.pattern.permute.xlu1 %v1838_v42  ;;  %v2165_v29 = vpop.permute.xlu1 %334 }
 0x13a   :  { %3386 = vst [vmem:[#allocation25_spill] sm:$0xff] %v2165_v29  ;;  %571 = vperm.xlu1 %1639, %v1927_v4   ;;  %v2192_v13 = vpop.permute.xlu0 %217 }
 0x13b   :  { %1666 = vset.pattern.permute.xlu0 %v3358_v17 }
 0x13c   :  { %848 = vperm.xlu0 %1666, %v1923_v2  }
 0x13e   :  { %574 = vperm.xlu1 %1639, %v1925_v3   ;;  %v2169_v31 = vpop.permute.xlu1 %348  ;;  %v2201_v0 = vpop.permute.xlu0 %231 }
 0x140   :  { %857 = vperm.xlu0 %1666, %v1929_v5  }
 0x142   :  { %1640 = vset.pattern.permute.xlu1 %v1839_v45  ;;  %v2176_v40 = vpop.permute.xlu1 %354 }
 0x143   :  { %3387 = vst [vmem:[#allocation26_spill] sm:$0xff] %v2176_v40  ;;  %588 = vperm.xlu1 %1640, %v1923_v2  }
 0x144   :  { %1669 = vset.pattern.permute.xlu0 %v3364_v62 }
 0x145   :  { %871 = vperm.xlu0 %1669, %v1927_v4  }
 0x146   :  { %v2179_v42 = vpop.permute.xlu1 %357 }
 0x147   :  { %594 = vperm.xlu1 %1640, %v1925_v3  }
 0x14b   :  { %597 = vperm.xlu1 %1640, %v1929_v5   ;;  %v2189_v45 = vpop.permute.xlu1 %371 }
 0x14f   :  { %1643 = vset.pattern.permute.xlu1 %v1840_v47  ;;  %v2195_v10 = vpop.permute.xlu1 %374  ;;  %v2208_v47 = vpop.permute.xlu0 %248 }
 0x150   :  { %3388 = vst [vmem:[#allocation27_spill] sm:$0xff] %v2195_v10  ;;  %611 = vperm.xlu1 %1643, %v1927_v4   ;;  %v3365_v10 = vmov 41  }
 0x151   :  { %1670 = vset.pattern.permute.xlu0 %v3365_v10 }
 0x152   :  { %888 = vperm.xlu0 %1670, %v1923_v2  }
 0x153   :  { %v2213_v52 = vpop.permute.xlu0 %257 }
 0x154   :  { %614 = vperm.xlu1 %1643, %v1925_v3   ;;  %v2199_v17 = vpop.permute.xlu1 %388 }
 0x156   :  { %897 = vperm.xlu0 %1670, %v1929_v5  }
 0x157   :  { %v2221_v62 = vpop.permute.xlu0 %271 }
 0x158   :  { %1644 = vset.pattern.permute.xlu1 %v1841_v50  ;;  %v2206_v57 = vpop.permute.xlu1 %394 }
 0x159   :  { %3389 = vst [vmem:[#allocation28_spill] sm:$0xff] %v2206_v57  ;;  %628 = vperm.xlu1 %1644, %v1923_v2   ;;  %v3390_v57 = vmov 29  }
 0x15a   :  { %1673 = vset.pattern.permute.xlu0 %v3366_v14 }
 0x15b   :  { %v2228_v29 = vpop.permute.xlu0 %288  ;;  %911 = vperm.xlu0 %1673, %v1927_v4  }
 0x15c   :  { %v2211_v55 = vpop.permute.xlu1 %397 }
 0x15d   :  { %634 = vperm.xlu1 %1644, %v1925_v3  }
 0x15f   :  { %v2233_v19 = vpop.permute.xlu0 %297  ;;  %1674 = vset.pattern.permute.xlu0 %v3367_v56 }
 0x160   :  { %928 = vperm.xlu0 %1674, %v1923_v2  }
 0x161   :  { %637 = vperm.xlu1 %1644, %v1929_v5   ;;  %v2219_v50 = vpop.permute.xlu1 %411 }
 0x164   :  { %937 = vperm.xlu0 %1674, %v1929_v5  }
 0x165   :  { %1647 = vset.pattern.permute.xlu1 %v3390_v57  ;;  %v2225_v40 = vpop.permute.xlu1 %414 }
 0x166   :  { %3391 = vst [vmem:[#allocation29_spill] sm:$0xff] %v2225_v40  ;;  %651 = vperm.xlu1 %1647, %v1927_v4   ;;  %v2241_v40 = vpop.permute.xlu0 %311 }
 0x168   :  { %1677 = vset.pattern.permute.xlu0 %v3368_v39 }
 0x169   :  { %951 = vperm.xlu0 %1677, %v1927_v4  }
 0x16a   :  { %654 = vperm.xlu1 %1647, %v1925_v3   ;;  %v2231_v10 = vpop.permute.xlu1 %428  ;;  %v2247_v53 = vpop.permute.xlu0 %328 }
 0x16b   :  { %3392 = vst [vmem:[#allocation30_spill] sm:$0xff] %v2231_v10 }
 0x16d   :  { %1678 = vset.pattern.permute.xlu0 %v3369_v28 }
 0x16e   :  { %1648 = vset.pattern.permute.xlu1 %v3393_v7  ;;  %v2238_v57 = vpop.permute.xlu1 %434  ;;  %v2253_v14 = vpop.permute.xlu0 %337  ;;  %968 = vperm.xlu0 %1678, %v1923_v2  }
 0x16f   :  { %3394 = vst [vmem:[#allocation31_spill] sm:$0xff] %v2238_v57  ;;  %668 = vperm.xlu1 %1648, %v1923_v2   ;;  %v3397_v57 = vmov 31  }
 0x172   :  { %v2243_v63 = vpop.permute.xlu1 %437  ;;  %v2260_v44 = vpop.permute.xlu0 %351  ;;  %977 = vperm.xlu0 %1678, %v1929_v5  }
 0x173   :  { %3395 = vst [vmem:[#allocation32_spill] sm:$0xff] %v2243_v63  ;;  %674 = vperm.xlu1 %1648, %v1925_v3   ;;  %v3370_v63 = vmov 46  }
 0x176   :  { %v2267_v36 = vpop.permute.xlu0 %368  ;;  %1681 = vset.pattern.permute.xlu0 %v3370_v63 }
 0x177   :  { %677 = vperm.xlu1 %1648, %v1929_v5   ;;  %v2251_v7 = vpop.permute.xlu1 %451  ;;  %991 = vperm.xlu0 %1681, %v1927_v4  }
 0x178   :  { %3396 = vst [vmem:[#allocation33_spill] sm:$0xff] %v2251_v7 }
 0x17b   :  { %1651 = vset.pattern.permute.xlu1 %v3397_v57  ;;  %v2257_v48 = vpop.permute.xlu1 %454 }
 0x17c   :  { %3398 = vst [vmem:[#allocation34_spill] sm:$0xff] %v2257_v48  ;;  %691 = vperm.xlu1 %1651, %v1927_v4   ;;  %v2273_v48 = vpop.permute.xlu0 %377 }
 0x180   :  { %694 = vperm.xlu1 %1651, %v1925_v3   ;;  %v2263_v56 = vpop.permute.xlu1 %468  ;;  %v2280_v39 = vpop.permute.xlu0 %391 }
 0x181   :  { %3399 = vst [vmem:[#allocation35_spill] sm:$0xff] %v2263_v56  ;;  %v3404_v56 = vmov 33  }
 0x184   :  { %1652 = vset.pattern.permute.xlu1 %v3400_v32  ;;  %v2270_v57 = vpop.permute.xlu1 %474 }
 0x185   :  { %3401 = vst [vmem:[#allocation36_spill] sm:$0xff] %v2270_v57  ;;  %708 = vperm.xlu1 %1652, %v1923_v2   ;;  %v2286_v57 = vpop.permute.xlu0 %408 }
 0x188   :  { %v2275_v23 = vpop.permute.xlu1 %477 }
 0x189   :  { %3402 = vst [vmem:[#allocation37_spill] sm:$0xff] %v2275_v23  ;;  %714 = vperm.xlu1 %1652, %v1925_v3   ;;  %v2292_v7 = vpop.permute.xlu0 %417 }
 0x18a   :  { %3406 = vst [vmem:[#allocation40_spill] sm:$0xff] %v2292_v7 }
 0x18d   :  { %717 = vperm.xlu1 %1652, %v1929_v5   ;;  %v2283_v32 = vpop.permute.xlu1 %491 }
 0x18e   :  { %3403 = vst [vmem:[#allocation38_spill] sm:$0xff] %v2283_v32  ;;  %v3408_v32 = vmov 34  }
 0x191   :  { %1655 = vset.pattern.permute.xlu1 %v3404_v56  ;;  %v2289_v23 = vpop.permute.xlu1 %494  ;;  %v2302_v56 = vpop.permute.xlu0 %431 }
 0x192   :  { %3405 = vst [vmem:[#allocation39_spill] sm:$0xff] %v2289_v23  ;;  %731 = vperm.xlu1 %1655, %v1927_v4   ;;  %3410 = vst [vmem:[#allocation43_spill] sm:$0xff] %v2302_v56  ;;  %v3413_v56 = vmov 35  }
 0x195   :  { %v2307_v7 = vpop.permute.xlu0 %448 }
 0x196   :  { %734 = vperm.xlu1 %1655, %v1925_v3   ;;  %v2295_v28 = vpop.permute.xlu1 %508  ;;  %3412 = vst [vmem:[#allocation45_spill] sm:$0xff] %v2307_v7 }
 0x197   :  { %3407 = vst [vmem:[#allocation41_spill] sm:$0xff] %v2295_v28  ;;  %v3371_v28 = vmov 47  }
 0x198   :  { %1682 = vset.pattern.permute.xlu0 %v3371_v28 }
 0x199   :  { %1008 = vperm.xlu0 %1682, %v1923_v2   ;;  %v2312_v63 = vpop.permute.xlu0 %457 }
 0x19a   :  { %1656 = vset.pattern.permute.xlu1 %v3408_v32  ;;  %v2300_v10 = vpop.permute.xlu1 %514 }
 0x19b   :  { %3409 = vst [vmem:[#allocation42_spill] sm:$0xff] %v2300_v10  ;;  %748 = vperm.xlu1 %1656, %v1923_v2   ;;  %v3372_v10 = vlaneseq }
 0x19d   :  { %1017 = vperm.xlu0 %1682, %v1929_v5   ;;  %v2323_v7 = vand.u32 127, %v3372_v10  ;;  %v2325_v28 = vpop.permute.xlu0 %471 }
 0x19e   :  { %v2305_v23 = vpop.permute.xlu1 %517 }
 0x19f   :  { %3411 = vst [vmem:[#allocation44_spill] sm:$0xff] %v2305_v23  ;;  %754 = vperm.xlu1 %1656, %v1925_v3   ;;  %vm83_vm0 = vcmp.eq.s32.totalorder %v2093_v59, %v2323_v7  ;;  %vm99_vm1 = vcmp.eq.s32.totalorder %v2108_v1, %v2323_v7  ;;  %vm84_vm2 = vcmp.eq.s32.totalorder %v2099_v61, %v2323_v7 }
 0x1a0   :  { %vm100_vm3 = vcmp.eq.s32.totalorder %v1999_v27, %v2323_v7  ;;  %vm102_vm4 = vcmp.eq.s32.totalorder %v2119_v8, %v2323_v7  ;;  %vm103_vm5 = vmor %vm83_vm0, %vm99_vm1  ;;  %vm119_vm6 = vcmp.eq.s32.totalorder %v2009_v30, %v2323_v7  ;;  %vm86_vm7 = vcmp.eq.s32.totalorder %v1994_v25, %v2323_v7 }
 0x1a1   :  { %v2340_v10 = vpop.permute.xlu0 %488  ;;  %vm104_vm8 = vmor %vm84_vm2, %vm100_vm3  ;;  %vm120_vm9 = vcmp.eq.s32.totalorder %v2126_v11, %v2323_v7  ;;  %vm122_vm11 = vcmp.eq.s32.totalorder %v2016_v33, %v2323_v7  ;;  %v3415_v27 = vmov 36   ;;  %vm139_vm13 = vcmp.eq.s32.totalorder %v2136_v15, %v2323_v7  ;;  %v3423_v15 = vld [vmem:[#allocation32_spill] sm:$0xff] }
 0x1a2   :  { %vm106_vm10 = vmor %vm86_vm7, %vm102_vm4  ;;  %vm140_vm15 = vcmp.eq.s32.totalorder %v2022_v35, %v2323_v7  ;;  %vm142_vm1 = vcmp.eq.s32.totalorder %v2144_v18, %v2323_v7  ;;  %vm159_vm3 = vcmp.eq.s32.totalorder %v2031_v38, %v2323_v7  ;;  %vm162_vm7 = vcmp.eq.s32.totalorder %v2039_v41, %v2323_v7 }
 0x1a3   :  { %757 = vperm.xlu1 %1656, %v1929_v5   ;;  %v2315_v32 = vpop.permute.xlu1 %531  ;;  %vm123_vm12 = vmor %vm103_vm5, %vm119_vm6  ;;  %vm160_vm5 = vcmp.eq.s32.totalorder %v2155_v22, %v2323_v7  ;;  %v1862_v33 = vmov 49   ;;  %v3418_v8 = vmov 39  }
 0x1a4   :  { %vm124_vm14 = vmor %vm104_vm8, %vm120_vm9  ;;  %vm179_vm9 = vcmp.eq.s32.totalorder %v2161_v26, %v2323_v7  ;;  %v3427_v26 = vld [vmem:[#allocation37_spill] sm:$0xff] }
 0x1a5   :  { %v2357_v30 = vpop.permute.xlu0 %497  ;;  %vm126_vm0 = vmor %vm106_vm10, %vm122_vm11  ;;  %vm180_vm11 = vcmp.eq.s32.totalorder %v2045_v43, %v2323_v7  ;;  %v3416_v43 = vmov 37  }
 0x1a6   :  { %vm143_vm2 = vmor %vm123_vm12, %vm139_vm13  ;;  %vm182_vm13 = vcmp.eq.s32.totalorder %v2172_v37, %v2323_v7 }
 0x1a7   :  { %1659 = vset.pattern.permute.xlu1 %v3413_v56  ;;  %v2319_v23 = vpop.permute.xlu1 %534  ;;  %vm144_vm4 = vmor %vm124_vm14, %vm140_vm15  ;;  %vm199_vm15 = vcmp.eq.s32.totalorder %v2055_v46, %v2323_v7 }
 0x1a8   :  { %3414 = vst [vmem:[#allocation46_spill] sm:$0xff] %v2319_v23  ;;  %771 = vperm.xlu1 %1659, %v1927_v4   ;;  %v1861_v23 = vmov 48   ;;  %vm146_vm6 = vmor %vm126_vm0, %vm142_vm1  ;;  %vm200_vm1 = vcmp.eq.s32.totalorder %v2181_v21, %v2323_v7  ;;  %v3426_v21 = vld [vmem:[#allocation35_spill] sm:$0xff] }
 0x1a9   :  { %1685 = vset.pattern.permute.xlu0 %v1861_v23  ;;  %vm163_vm8 = vmor %vm143_vm2, %vm159_vm3  ;;  %v2376_v35 = vpop.permute.xlu0 %511  ;;  %vm202_vm3 = vcmp.eq.s32.totalorder %v2064_v49, %v2323_v7 }
 0x1aa   :  { %1031 = vperm.xlu0 %1685, %v1927_v4   ;;  %vm164_vm10 = vmor %vm144_vm4, %vm160_vm5  ;;  %vm219_vm5 = vcmp.eq.s32.totalorder %v2186_v34, %v2323_v7  ;;  %v3430_v34 = vld [vmem:[#allocation41_spill] sm:$0xff] }
 0x1ab   :  { %vm166_vm12 = vmor %vm146_vm6, %vm162_vm7  ;;  %vm220_vm7 = vcmp.eq.s32.totalorder %v2070_v51, %v2323_v7  ;;  %v1863_v51 = vmov 50  }
 0x1ac   :  { %774 = vperm.xlu1 %1659, %v1925_v3   ;;  %v2336_v56 = vpop.permute.xlu1 %548  ;;  %vm183_vm14 = vmor %vm163_vm8, %vm179_vm9  ;;  %vm222_vm9 = vcmp.eq.s32.totalorder %v2192_v13, %v2323_v7  ;;  %v3420_v13 = vld [vmem:[#allocation40_spill] sm:$0xff] }
 0x1ad   :  { %vm184_vm0 = vmor %vm164_vm10, %vm180_vm11  ;;  %v2390_v41 = vpop.permute.xlu0 %528  ;;  %vm239_vm11 = vcmp.eq.s32.totalorder %v2080_v54, %v2323_v7 }
 0x1ae   :  { %1686 = vset.pattern.permute.xlu0 %v1862_v33  ;;  %vm186_vm2 = vmor %vm166_vm12, %vm182_vm13  ;;  %vm240_vm13 = vcmp.eq.s32.totalorder %v2201_v0, %v2323_v7 }
 0x1af   :  { %1048 = vperm.xlu0 %1686, %v1923_v2   ;;  %vm203_vm4 = vmor %vm183_vm14, %vm199_vm15  ;;  %vm242_vm15 = vcmp.eq.s32.totalorder %v2089_v58, %v2323_v7  ;;  %v3417_v58 = vmov 38  }
 0x1b0   :  { %1660 = vset.pattern.permute.xlu1 %v3415_v27  ;;  %v2353_v59 = vpop.permute.xlu1 %554  ;;  %vm204_vm6 = vmor %vm184_vm0, %vm200_vm1  ;;  %vm259_vm1 = vcmp.eq.s32.totalorder %v2208_v47, %v2323_v7 }
 0x1b1   :  { %788 = vperm.xlu1 %1660, %v1923_v2   ;;  %vm206_vm8 = vmor %vm186_vm2, %vm202_vm3  ;;  %v2405_v46 = vpop.permute.xlu0 %537  ;;  %vm260_vm3 = vcmp.eq.s32.totalorder %v2097_v60, %v2323_v7 }
 0x1b2   :  { %vm223_vm10 = vmor %vm203_vm4, %vm219_vm5  ;;  %vm262_vm5 = vcmp.eq.s32.totalorder %v2213_v52, %v2323_v7 }
 0x1b3   :  { %1057 = vperm.xlu0 %1686, %v1929_v5   ;;  %vm224_vm12 = vmor %vm204_vm6, %vm220_vm7  ;;  %vm279_vm7 = vcmp.eq.s32.totalorder %v2111_v6, %v2323_v7 }
 0x1b4   :  { %v2366_v25 = vpop.permute.xlu1 %557  ;;  %vm226_vm14 = vmor %vm206_vm8, %vm222_vm9  ;;  %vm280_vm9 = vcmp.eq.s32.totalorder %v2221_v62, %v2323_v7  ;;  %v1864_v62 = vmov 51  }
 0x1b5   :  { %794 = vperm.xlu1 %1660, %v1925_v3   ;;  %vm243_vm0 = vmor %vm223_vm10, %vm239_vm11  ;;  %v2424_v54 = vpop.permute.xlu0 %551  ;;  %vm282_vm11 = vcmp.eq.s32.totalorder %v2121_v9, %v2323_v7 }
 0x1b6   :  { %vm244_vm2 = vmor %vm224_vm12, %vm240_vm13  ;;  %vm299_vm13 = vcmp.eq.s32.totalorder %v2228_v29, %v2323_v7  ;;  %v3429_v29 = vmov 41  }
 0x1b7   :  { %1689 = vset.pattern.permute.xlu0 %v1863_v51  ;;  %vm246_vm4 = vmor %vm226_vm14, %vm242_vm15  ;;  %vm300_vm15 = vcmp.eq.s32.totalorder %v2129_v12, %v2323_v7 }
 0x1b8   :  { %1071 = vperm.xlu0 %1689, %v1927_v4   ;;  %vm263_vm6 = vmor %vm243_vm0, %vm259_vm1  ;;  %vm302_vm1 = vcmp.eq.s32.totalorder %v2233_v19, %v2323_v7  ;;  %v3425_v19 = vld [vmem:[#allocation33_spill] sm:$0xff] }
 0x1b9   :  { %797 = vperm.xlu1 %1660, %v1929_v5   ;;  %v2384_v38 = vpop.permute.xlu1 %571  ;;  %vm264_vm8 = vmor %vm244_vm2, %vm260_vm3  ;;  %v2438_v52 = vpop.permute.xlu0 %568  ;;  %vm319_vm3 = vcmp.eq.s32.totalorder %v2141_v16, %v2323_v7 }
 0x1ba   :  { %vm266_vm10 = vmor %vm246_vm4, %vm262_vm5  ;;  %vm320_vm5 = vcmp.eq.s32.totalorder %v2241_v40, %v2323_v7 }
 0x1bb   :  { %vm283_vm12 = vmor %vm263_vm6, %vm279_vm7  ;;  %vm322_vm7 = vcmp.eq.s32.totalorder %v2151_v20, %v2323_v7  ;;  %v1866_v20 = vmov 53  }
 0x1bc   :  { %vm284_vm14 = vmor %vm264_vm8, %vm280_vm9  ;;  %1690 = vset.pattern.permute.xlu0 %v1864_v62  ;;  %vm339_vm9 = vcmp.eq.s32.totalorder %v2247_v53, %v2323_v7 }
 0x1bd   :  { %1663 = vset.pattern.permute.xlu1 %v3416_v43  ;;  %v2398_v61 = vpop.permute.xlu1 %574  ;;  %vm286_vm0 = vmor %vm266_vm10, %vm282_vm11  ;;  %v2452_v1 = vpop.permute.xlu0 %577  ;;  %1088 = vperm.xlu0 %1690, %v1923_v2   ;;  %vm340_vm11 = vcmp.eq.s32.totalorder %v2159_v24, %v2323_v7 }
 0x1be   :  { %811 = vperm.xlu1 %1663, %v1927_v4   ;;  %vm303_vm2 = vmor %vm283_vm12, %vm299_vm13  ;;  %vm342_vm13 = vcmp.eq.s32.totalorder %v2253_v14, %v2323_v7  ;;  %v3422_v14 = vld [vmem:[#allocation43_spill] sm:$0xff] }
 0x1bf   :  { %vm304_vm4 = vmor %vm284_vm14, %vm300_vm15  ;;  %vm359_vm15 = vcmp.eq.s32.totalorder %v2169_v31, %v2323_v7 }
 0x1c0   :  { %vm306_vm6 = vmor %vm286_vm0, %vm302_vm1  ;;  %vm360_vm1 = vcmp.eq.s32.totalorder %v2260_v44, %v2323_v7 }
 0x1c1   :  { %vm323_vm8 = vmor %vm303_vm2, %vm319_vm3  ;;  %1097 = vperm.xlu0 %1690, %v1929_v5   ;;  %v2471_v53 = vpop.permute.xlu0 %591  ;;  %vm362_vm3 = vcmp.eq.s32.totalorder %v2179_v42, %v2323_v7  ;;  %v1867_v42 = vmov 54  }
 0x1c2   :  { %814 = vperm.xlu1 %1663, %v1925_v3   ;;  %v2414_v49 = vpop.permute.xlu1 %588  ;;  %vm324_vm10 = vmor %vm304_vm4, %vm320_vm5  ;;  %vm379_vm5 = vcmp.eq.s32.totalorder %v2267_v36, %v2323_v7  ;;  %v1865_v36 = vmov 52  }
 0x1c3   :  { %vm326_vm12 = vmor %vm306_vm6, %vm322_vm7  ;;  %vm380_vm7 = vcmp.eq.s32.totalorder %v2189_v45, %v2323_v7  ;;  %v3432_v45 = vmov 42  }
 0x1c4   :  { %vm343_vm14 = vmor %vm323_vm8, %vm339_vm9  ;;  %vm382_vm9 = vcmp.eq.s32.totalorder %v2273_v48, %v2323_v7 }
 0x1c5   :  { %vm344_vm0 = vmor %vm324_vm10, %vm340_vm11  ;;  %v2485_v44 = vpop.permute.xlu0 %608  ;;  %vm399_vm11 = vcmp.eq.s32.totalorder %v2199_v17, %v2323_v7  ;;  %1693 = vset.pattern.permute.xlu0 %v1865_v36  ;;  %v3424_v17 = vld [vmem:[#allocation45_spill] sm:$0xff] }
 0x1c6   :  { %1664 = vset.pattern.permute.xlu1 %v3417_v58  ;;  %v2429_v0 = vpop.permute.xlu1 %594  ;;  %vm346_vm2 = vmor %vm326_vm12, %vm342_vm13  ;;  %vm400_vm13 = vcmp.eq.s32.totalorder %v2280_v39, %v2323_v7  ;;  %1111 = vperm.xlu0 %1693, %v1927_v4   ;;  %v3419_v39 = vmov 40  }
 0x1c7   :  { %828 = vperm.xlu1 %1664, %v1923_v2   ;;  %vm363_vm4 = vmor %vm343_vm14, %vm359_vm15  ;;  %vm402_vm15 = vcmp.eq.s32.totalorder %v2211_v55, %v2323_v7  ;;  %v3421_v55 = vld [vmem:[#allocation30_spill] sm:$0xff] }
 0x1c8   :  { %vm364_vm6 = vmor %vm344_vm0, %vm360_vm1  ;;  %vm419_vm1 = vcmp.eq.s32.totalorder %v2286_v57, %v2323_v7 }
 0x1c9   :  { %vm366_vm8 = vmor %vm346_vm2, %vm362_vm3  ;;  %v2500_v48 = vpop.permute.xlu0 %617  ;;  %vm420_vm3 = vcmp.eq.s32.totalorder %v2219_v50, %v2323_v7 }
 0x1ca   :  { %v2442_v60 = vpop.permute.xlu1 %597  ;;  %vm383_vm10 = vmor %vm363_vm4, %vm379_vm5  ;;  %vm422_vm5 = vcmp.eq.s32.totalorder %v3420_v13, %v2323_v7  ;;  %1694 = vset.pattern.permute.xlu0 %v1866_v20 }
 0x1cb   :  { %834 = vperm.xlu1 %1664, %v1925_v3   ;;  %vm384_vm12 = vmor %vm364_vm6, %vm380_vm7  ;;  %vm439_vm7 = vcmp.eq.s32.totalorder %v3421_v55, %v2323_v7  ;;  %1128 = vperm.xlu0 %1694, %v1923_v2  }
 0x1cc   :  { %vm386_vm14 = vmor %vm366_vm8, %vm382_vm9  ;;  %vm440_vm9 = vcmp.eq.s32.totalorder %v3422_v14, %v2323_v7 }
 0x1cd   :  { %vm403_vm0 = vmor %vm383_vm10, %vm399_vm11  ;;  %vm442_vm11 = vcmp.eq.s32.totalorder %v3423_v15, %v2323_v7  ;;  %v2520_v18 = vpop.permute.xlu0 %631  ;;  %v3468_v15 = vld [vmem:[#allocation13_spill] sm:$0xff] }
 0x1ce   :  { %vm404_vm2 = vmor %vm384_vm12, %vm400_vm13  ;;  %vm459_vm13 = vcmp.eq.s32.totalorder %v3424_v17, %v2323_v7 }
 0x1cf   :  { %837 = vperm.xlu1 %1664, %v1929_v5   ;;  %v2460_v6 = vpop.permute.xlu1 %611  ;;  %vm406_vm4 = vmor %vm386_vm14, %vm402_vm15  ;;  %vm460_vm15 = vcmp.eq.s32.totalorder %v3425_v19, %v2323_v7  ;;  %1137 = vperm.xlu0 %1694, %v1929_v5  }
 0x1d0   :  { %vm423_vm6 = vmor %vm403_vm0, %vm419_vm1  ;;  %vm462_vm1 = vcmp.eq.s32.totalorder %v2312_v63, %v2323_v7  ;;  %v3428_v63 = vld [vmem:[#allocation38_spill] sm:$0xff] }
 0x1d1   :  { %vm424_vm8 = vmor %vm404_vm2, %vm420_vm3  ;;  %vm479_vm3 = vcmp.eq.s32.totalorder %v3426_v21, %v2323_v7  ;;  %v2533_v22 = vpop.permute.xlu0 %648 }
 0x1d2   :  { %vm426_vm10 = vmor %vm406_vm4, %vm422_vm5  ;;  %vm480_vm5 = vcmp.eq.s32.totalorder %v2325_v28, %v2323_v7 }
 0x1d3   :  { %1667 = vset.pattern.permute.xlu1 %v3418_v8  ;;  %v2474_v9 = vpop.permute.xlu1 %614  ;;  %vm443_vm12 = vmor %vm423_vm6, %vm439_vm7  ;;  %vm482_vm7 = vcmp.eq.s32.totalorder %v3427_v26, %v2323_v7  ;;  %1697 = vset.pattern.permute.xlu0 %v1867_v42  ;;  %v1871_v8 = vmov 57  }
 0x1d4   :  { %851 = vperm.xlu1 %1667, %v1927_v4   ;;  %vm444_vm14 = vmor %vm424_vm8, %vm440_vm9  ;;  %vm499_vm9 = vcmp.eq.s32.totalorder %v2340_v10, %v2323_v7  ;;  %v3431_v10 = vld [vmem:[#allocation44_spill] sm:$0xff]  ;;  %1151 = vperm.xlu0 %1697, %v1927_v4  }
 0x1d5   :  { %vm446_vm0 = vmor %vm426_vm10, %vm442_vm11  ;;  %vm500_vm11 = vcmp.eq.s32.totalorder %v3428_v63, %v2323_v7  ;;  %v2547_v28 = vpop.permute.xlu0 %657 }
 0x1d6   :  { %vm463_vm2 = vmor %vm443_vm12, %vm459_vm13  ;;  %vm502_vm13 = vcmp.eq.s32.totalorder %v2357_v30, %v2323_v7 }
 0x1d7   :  { %vm464_vm4 = vmor %vm444_vm14, %vm460_vm15  ;;  %vm519_vm15 = vcmp.eq.s32.totalorder %v3430_v34, %v2323_v7 }
 0x1d8   :  { %854 = vperm.xlu1 %1667, %v1925_v3   ;;  %v2490_v11 = vpop.permute.xlu1 %628  ;;  %vm466_vm6 = vmor %vm446_vm0, %vm462_vm1  ;;  %vm520_vm1 = vcmp.eq.s32.totalorder %v2376_v35, %v2323_v7  ;;  %v3435_v35 = vmov 43  }
 0x1d9   :  { %vm483_vm8 = vmor %vm463_vm2, %vm479_vm3  ;;  %vm522_vm3 = vcmp.eq.s32.totalorder %v3431_v10, %v2323_v7  ;;  %v2568_v40 = vpop.permute.xlu0 %671  ;;  %v1873_v10 = vmov 61  }
 0x1da   :  { %vm484_vm10 = vmor %vm464_vm4, %vm480_vm5  ;;  %vm539_vm5 = vcmp.eq.s32.totalorder %v2390_v41, %v2323_v7  ;;  %v1869_v41 = vmov 56  }
 0x1db   :  { %vm486_vm12 = vmor %vm466_vm6, %vm482_vm7  ;;  %vm540_vm7 = vcmp.eq.s32.totalorder %v2315_v32, %v2323_v7 }
 0x1dc   :  { %1668 = vset.pattern.permute.xlu1 %v3419_v39  ;;  %v2505_v12 = vpop.permute.xlu1 %634  ;;  %vm503_vm14 = vmor %vm483_vm8, %vm499_vm9  ;;  %vm542_vm9 = vcmp.eq.s32.totalorder %v2405_v46, %v2323_v7  ;;  %v3445_v39 = vmov 45  }
 0x1dd   :  { %868 = vperm.xlu1 %1668, %v1923_v2   ;;  %vm504_vm0 = vmor %vm484_vm10, %vm500_vm11  ;;  %vm559_vm11 = vcmp.eq.s32.totalorder %v2336_v56, %v2323_v7  ;;  %v689_v50 = vpop.permute.xlu0 %688  ;;  %v1868_v56 = vmov 55  }
 0x1de   :  { %vm506_vm2 = vmor %vm486_vm12, %vm502_vm13  ;;  %vm560_vm13 = vcmp.eq.s32.totalorder %v2424_v54, %v2323_v7  ;;  %1698 = vset.pattern.permute.xlu0 %v1868_v56  ;;  %v1870_v54 = vmov 58  }
 0x1df   :  { %vm523_vm4 = vmor %vm503_vm14, %vm519_vm15  ;;  %vm562_vm15 = vcmp.eq.s32.totalorder %v2366_v25, %v2323_v7  ;;  %1168 = vperm.xlu0 %1698, %v1923_v2  }
 0x1e0   :  { %v2516_v16 = vpop.permute.xlu1 %637  ;;  %vm524_vm6 = vmor %vm504_vm0, %vm520_vm1  ;;  %vm579_vm1 = vcmp.eq.s32.totalorder %v2438_v52, %v2323_v7  ;;  %v3440_v52 = vmov 44  }
 0x1e1   :  { %874 = vperm.xlu1 %1668, %v1925_v3   ;;  %vm526_vm8 = vmor %vm506_vm2, %vm522_vm3  ;;  %vm580_vm3 = vcmp.eq.s32.totalorder %v2384_v38, %v2323_v7  ;;  %v698_v32 = vpop.permute.xlu0 %697 }
 0x1e2   :  { %vm543_vm10 = vmor %vm523_vm4, %vm539_vm5  ;;  %vm582_vm5 = vcmp.eq.s32.totalorder %v2452_v1, %v2323_v7 }
 0x1e3   :  { %vm544_vm12 = vmor %vm524_vm6, %vm540_vm7  ;;  %vm599_vm7 = vcmp.eq.s32.totalorder %v2414_v49, %v2323_v7  ;;  %1177 = vperm.xlu0 %1698, %v1929_v5  }
 0x1e4   :  { %vm546_vm14 = vmor %vm526_vm8, %vm542_vm9  ;;  %vm600_vm9 = vcmp.eq.s32.totalorder %v2471_v53, %v2323_v7 }
 0x1e5   :  { %877 = vperm.xlu1 %1668, %v1929_v5   ;;  %v2536_v24 = vpop.permute.xlu1 %651  ;;  %vm563_vm0 = vmor %vm543_vm10, %vm559_vm11  ;;  %vm602_vm11 = vcmp.eq.s32.totalorder %v2442_v60, %v2323_v7  ;;  %v712_v30 = vpop.permute.xlu0 %711 }
 0x1e6   :  { %vm564_vm2 = vmor %vm544_vm12, %vm560_vm13  ;;  %vm619_vm13 = vcmp.eq.s32.totalorder %v2485_v44, %v2323_v7  ;;  %v3491_v44 = vld [vmem:[#allocation29_spill] sm:$0xff] }
 0x1e7   :  { %vm566_vm4 = vmor %vm546_vm14, %vm562_vm15  ;;  %vm639_vm15 = vcmp.eq.s32.totalorder %v2490_v11, %v2323_v7  ;;  %1701 = vset.pattern.permute.xlu0 %v1869_v41 }
 0x1e8   :  { %vm583_vm6 = vmor %vm563_vm0, %vm579_vm1  ;;  %vm622_vm1 = vcmp.eq.s32.totalorder %v2500_v48, %v2323_v7  ;;  %1191 = vperm.xlu0 %1701, %v1927_v4  }
 0x1e9   :  { %1671 = vset.pattern.permute.xlu1 %v3429_v29  ;;  %v2550_v31 = vpop.permute.xlu1 %654  ;;  %vm584_vm8 = vmor %vm564_vm2, %vm580_vm3  ;;  %vm620_vm3 = vcmp.eq.s32.totalorder %v2460_v6, %v2323_v7  ;;  %v729_v43 = vpop.permute.xlu0 %728 }
 0x1ea   :  { %891 = vperm.xlu1 %1671, %v1927_v4   ;;  %vm586_vm10 = vmor %vm566_vm4, %vm582_vm5  ;;  %vm659_vm5 = vcmp.eq.s32.totalorder %v2533_v22, %v2323_v7  ;;  %v3472_v22 = vld [vmem:[#allocation16_spill] sm:$0xff] }
 0x1eb   :  { %vm603_vm12 = vmor %vm583_vm6, %vm599_vm7  ;;  %vm642_vm7 = vcmp.eq.s32.totalorder %v2516_v16, %v2323_v7  ;;  %v3448_v16 = vmov 46  }
 0x1ec   :  { %vm604_vm14 = vmor %vm584_vm8, %vm600_vm9  ;;  %1703 = vset.pattern.permute.xlu0 %v1870_v54 }
 0x1ed   :  { %vm606_vm0 = vmor %vm586_vm10, %vm602_vm11  ;;  %vm640_vm10 = vcmp.eq.s32.totalorder %v2520_v18, %v2323_v7  ;;  %1231 = vperm.xlu0 %1703, %v1927_v4   ;;  %v738_v1 = vpop.permute.xlu0 %737 }
 0x1ee   :  { %894 = vperm.xlu1 %1671, %v1925_v3   ;;  %v2564_v37 = vpop.permute.xlu1 %668  ;;  %vm623_vm2 = vmor %vm603_vm12, %vm619_vm13  ;;  %vm662_vm13 = vcmp.eq.s32.totalorder %v2547_v28, %v2323_v7  ;;  %v3453_v28 = vmov 47  }
 0x1ef   :  { %vm643_vm4 = vmor %vm623_vm2, %vm639_vm15  ;;  %vm679_vm9 = vcmp.eq.s32.totalorder %v2564_v37, %v2323_v7  ;;  %vm699_vm15 = vcmp.eq.s32.totalorder %v689_v50, %v2323_v7  ;;  %vm739_vm2 = vcmp.eq.s32.totalorder %v729_v43, %v2323_v7  ;;  %v1874_v43 = vmov 62  }
 0x1f0   :  { %vm626_vm6 = vmor %vm606_vm0, %vm622_vm1 }
 0x1f1   :  { %vm2611_vm8 = vmor %vm604_vm14, %vm620_vm3  ;;  %vm660_vm3 = vcmp.eq.s32.totalorder %v2536_v24, %v2323_v7  ;;  %1234 = vperm.xlu0 %1703, %v1925_v3   ;;  %v752_v53 = vpop.permute.xlu0 %751  ;;  %v1872_v24 = vmov 60  }
 0x1f2   :  { %1672 = vset.pattern.permute.xlu1 %v3432_v45  ;;  %v2579_v47 = vpop.permute.xlu1 %674  ;;  %vm663_vm11 = vmor %vm643_vm4, %vm659_vm5 }
 0x1f3   :  { %908 = vperm.xlu1 %1672, %v1923_v2   ;;  %vm646_vm12 = vmor %vm626_vm6, %vm642_vm7 }
 0x1f4   :  { %vm683_vm14 = vmor %vm663_vm11, %vm679_vm9 }
 0x1f5   :  { %vm644_vm0 = vmor %vm2611_vm8, %vm640_vm10  ;;  %vm680_vm10 = vcmp.eq.s32.totalorder %v2568_v40, %v2323_v7  ;;  %1706 = vset.pattern.permute.xlu0 %v1871_v8  ;;  %v769_v55 = vpop.permute.xlu0 %768 }
 0x1f6   :  { %v678_v57 = vpop.permute.xlu1 %677  ;;  %vm2630_vm1 = vmor %vm646_vm12, %vm662_vm13  ;;  %vm702_vm12 = vcmp.eq.s32.totalorder %v698_v32, %v2323_v7  ;;  %1208 = vperm.xlu0 %1706, %v1923_v2  }
 0x1f7   :  { %914 = vperm.xlu1 %1672, %v1925_v3   ;;  %vm703_vm4 = vmor %vm683_vm14, %vm699_vm15  ;;  %vm682_vm6 = vcmp.eq.s32.totalorder %v678_v57, %v2323_v7 }
 0x1f8   :  { %vm664_vm9 = vmor %vm644_vm0, %vm660_vm3  ;;  %vm742_vm0 = vcmp.eq.s32.totalorder %v738_v1, %v2323_v7 }
 0x1f9   :  { %vm686_vm11 = vmor %vm2630_vm1, %vm682_vm6  ;;  %vm720_vm1 = vcmp.eq.s32.totalorder %v712_v30, %v2323_v7  ;;  %vm760_vm6 = vcmp.eq.s32.totalorder %v752_v53, %v2323_v7  ;;  %v778_v18 = vpop.permute.xlu0 %777  ;;  %v1875_v53 = vmov 63   ;;  %v3483_v30 = vld [vmem:[#allocation23_spill] sm:$0xff] }
 0x1fa   :  { %vm684_vm14 = vmor %vm664_vm9, %vm680_vm10  ;;  %1217 = vperm.xlu0 %1706, %v1929_v5  }
 0x1fb   :  { %917 = vperm.xlu1 %1672, %v1929_v5   ;;  %v692_v27 = vpop.permute.xlu1 %691  ;;  %vm706_vm15 = vmor %vm686_vm11, %vm702_vm12  ;;  %vm779_vm12 = vcmp.eq.s32.totalorder %v769_v55, %v2323_v7 }
 0x1fc   :  { %vm700_vm13 = vcmp.eq.s32.totalorder %v692_v27, %v2323_v7 }
 0x1fd   :  { %v792_v21 = vpop.permute.xlu0 %791 }
 0x1fe   :  { %1711 = vset.pattern.permute.xlu0 %v1872_v24 }
 0x1ff   :  { %1675 = vset.pattern.permute.xlu1 %v3435_v35  ;;  %v2618_v38 = vpop.permute.xlu1 %694  ;;  %1274 = vperm.xlu0 %1711, %v1925_v3  }
 0x200   :  { %931 = vperm.xlu1 %1675, %v1927_v4  }
 0x201   :  { %v809_v34 = vpop.permute.xlu0 %808 }
 0x203   :  { %1277 = vperm.xlu0 %1711, %v1929_v5  }
 0x204   :  { %934 = vperm.xlu1 %1675, %v1925_v3   ;;  %v709_v49 = vpop.permute.xlu1 %708 }
 0x205   :  { %vm719_vm5 = vcmp.eq.s32.totalorder %v709_v49, %v2323_v7  ;;  %v818_v50 = vpop.permute.xlu0 %817 }
 0x206   :  { %vm723_vm7 = vmor %vm703_vm4, %vm719_vm5 }
 0x207   :  { %vm2642_vm8 = vmor %vm723_vm7, %vm739_vm2  ;;  %1716 = vset.pattern.permute.xlu0 %v1873_v10 }
 0x208   :  { %1676 = vset.pattern.permute.xlu1 %v3440_v52  ;;  %v2649_v60 = vpop.permute.xlu1 %714  ;;  %vm704_vm2 = vmor %vm684_vm14, %vm700_vm13  ;;  %1291 = vperm.xlu0 %1716, %v1927_v4  }
 0x209   :  { %948 = vperm.xlu1 %1676, %v1923_v2   ;;  %vm724_vm7 = vmor %vm704_vm2, %vm720_vm1  ;;  %v832_v32 = vpop.permute.xlu0 %831 }
 0x20c   :  { %v718_v6 = vpop.permute.xlu1 %717  ;;  %1288 = vperm.xlu0 %1716, %v1923_v2  }
 0x20d   :  { %vm722_vm3 = vcmp.eq.s32.totalorder %v718_v6, %v2323_v7  ;;  %954 = vperm.xlu1 %1676, %v1925_v3   ;;  %v849_v35 = vpop.permute.xlu0 %848 }
 0x20e   :  { %vm726_vm4 = vmor %vm706_vm15, %vm722_vm3 }
 0x20f   :  { %vm2662_vm5 = vmor %vm726_vm4, %vm742_vm0  ;;  %vm782_vm0 = vcmp.eq.s32.totalorder %v778_v18, %v2323_v7  ;;  %vm800_vm4 = vcmp.eq.s32.totalorder %v792_v21, %v2323_v7 }
 0x210   :  { %1297 = vperm.xlu0 %1716, %v1929_v5  }
 0x211   :  { %957 = vperm.xlu1 %1676, %v1929_v5   ;;  %v732_v11 = vpop.permute.xlu1 %731  ;;  %v858_v58 = vpop.permute.xlu0 %857 }
 0x212   :  { %vm740_vm9 = vcmp.eq.s32.totalorder %v732_v11, %v2323_v7 }
 0x213   :  { %vm744_vm10 = vmor %vm724_vm7, %vm740_vm9  ;;  %vm819_vm7 = vcmp.eq.s32.totalorder %v809_v34, %v2323_v7  ;;  %v3476_v34 = vld [vmem:[#allocation18_spill] sm:$0xff] }
 0x214   :  { %vm2671_vm11 = vmor %vm744_vm10, %vm760_vm6  ;;  %1719 = vset.pattern.permute.xlu0 %v1874_v43 }
 0x215   :  { %1679 = vset.pattern.permute.xlu1 %v3445_v39  ;;  %v2676_v13 = vpop.permute.xlu1 %734  ;;  %1317 = vperm.xlu0 %1719, %v1929_v5   ;;  %v872_v1 = vpop.permute.xlu0 %871 }
 0x216   :  { %971 = vperm.xlu1 %1679, %v1927_v4  }
 0x219   :  { %1720 = vset.pattern.permute.xlu0 %v1875_v53  ;;  %v889_v48 = vpop.permute.xlu0 %888 }
 0x21a   :  { %974 = vperm.xlu1 %1679, %v1925_v3   ;;  %v749_v14 = vpop.permute.xlu1 %748 }
 0x21b   :  { %vm759_vm13 = vcmp.eq.s32.totalorder %v749_v14, %v2323_v7 }
 0x21c   :  { %vm763_vm14 = vmor %vm2642_vm8, %vm759_vm13 }
 0x21d   :  { %vm2684_vm15 = vmor %vm763_vm14, %vm779_vm12  ;;  %vm822_vm12 = vcmp.eq.s32.totalorder %v818_v50, %v2323_v7  ;;  %v898_v14 = vpop.permute.xlu0 %897  ;;  %v3480_v50 = vld [vmem:[#allocation20_spill] sm:$0xff] }
 0x21e   :  { %1680 = vset.pattern.permute.xlu1 %v3448_v16  ;;  %v2689_v17 = vpop.permute.xlu1 %754  ;;  %v3469_v16 = vld [vmem:[#allocation12_spill] sm:$0xff] }
 0x21f   :  { %988 = vperm.xlu1 %1680, %v1923_v2  }
 0x221   :  { %v912_v21 = vpop.permute.xlu0 %911 }
 0x222   :  { %v758_v19 = vpop.permute.xlu1 %757 }
 0x223   :  { %vm762_vm2 = vcmp.eq.s32.totalorder %v758_v19, %v2323_v7  ;;  %994 = vperm.xlu1 %1680, %v1925_v3   ;;  %v3470_v19 = vld [vmem:[#allocation14_spill] sm:$0xff] }
 0x224   :  { %vm766_vm8 = vmor %vm2662_vm5, %vm762_vm2 }
 0x225   :  { %vm2697_vm3 = vmor %vm766_vm8, %vm782_vm0  ;;  %vm840_vm0 = vcmp.eq.s32.totalorder %v832_v32, %v2323_v7  ;;  %v3481_v32 = vld [vmem:[#allocation21_spill] sm:$0xff] }
 0x227   :  { %997 = vperm.xlu1 %1680, %v1929_v5   ;;  %v772_v26 = vpop.permute.xlu1 %771 }
 0x228   :  { %vm780_vm1 = vcmp.eq.s32.totalorder %v772_v26, %v2323_v7 }
 0x229   :  { %vm784_vm5 = vmor %vm2671_vm11, %vm780_vm1 }
 0x22a   :  { %vm2708_vm6 = vmor %vm784_vm5, %vm800_vm4 }
 0x22b   :  { %1683 = vset.pattern.permute.xlu1 %v3453_v28  ;;  %v2714_v29 = vpop.permute.xlu1 %774  ;;  %v3475_v28 = vld [vmem:[#allocation17_spill] sm:$0xff] }
 0x22c   :  { %1011 = vperm.xlu1 %1683, %v1927_v4  }
 0x230   :  { %1014 = vperm.xlu1 %1683, %v1925_v3   ;;  %v789_v37 = vpop.permute.xlu1 %788 }
 0x231   :  { %vm799_vm9 = vcmp.eq.s32.totalorder %v789_v37, %v2323_v7  ;;  %v3477_v37 = vld [vmem:[#allocation19_spill] sm:$0xff] }
 0x232   :  { %vm803_vm10 = vmor %vm2684_vm15, %vm799_vm9 }
 0x233   :  { %vm2724_vm11 = vmor %vm803_vm10, %vm819_vm7  ;;  %vm862_vm7 = vcmp.eq.s32.totalorder %v858_v58, %v2323_v7 }
 0x234   :  { %1684 = vset.pattern.permute.xlu1 %v1861_v23  ;;  %v2730_v45 = vpop.permute.xlu1 %794  ;;  %v3482_v23 = vld [vmem:[#allocation22_spill] sm:$0xff] }
 0x235   :  { %1028 = vperm.xlu1 %1684, %v1923_v2  }
 0x238   :  { %v798_v57 = vpop.permute.xlu1 %797 }
 0x239   :  { %vm802_vm13 = vcmp.eq.s32.totalorder %v798_v57, %v2323_v7  ;;  %1034 = vperm.xlu1 %1684, %v1925_v3  }
 0x23a   :  { %vm806_vm14 = vmor %vm2697_vm3, %vm802_vm13  ;;  %vm859_vm3 = vcmp.eq.s32.totalorder %v849_v35, %v2323_v7  ;;  %v3484_v35 = vld [vmem:[#allocation24_spill] sm:$0xff] }
 0x23b   :  { %vm2739_vm15 = vmor %vm806_vm14, %vm822_vm12  ;;  %vm880_vm12 = vcmp.eq.s32.totalorder %v872_v1, %v2323_v7 }
 0x23d   :  { %1037 = vperm.xlu1 %1684, %v1929_v5   ;;  %v812_v27 = vpop.permute.xlu1 %811 }
 0x23e   :  { %vm820_vm2 = vcmp.eq.s32.totalorder %v812_v27, %v2323_v7  ;;  %v929_v27 = vpop.permute.xlu0 %928 }
 0x23f   :  { %vm824_vm8 = vmor %vm2708_vm6, %vm820_vm2 }
 0x240   :  { %vm2748_vm4 = vmor %vm824_vm8, %vm840_vm0 }
 0x241   :  { %1687 = vset.pattern.permute.xlu1 %v1862_v33  ;;  %v2753_v25 = vpop.permute.xlu1 %814  ;;  %v3486_v33 = vld [vmem:[#allocation26_spill] sm:$0xff] }
 0x242   :  { %1051 = vperm.xlu1 %1687, %v1927_v4   ;;  %v938_v6 = vpop.permute.xlu0 %937 }
 0x246   :  { %1054 = vperm.xlu1 %1687, %v1925_v3   ;;  %v829_v46 = vpop.permute.xlu1 %828  ;;  %v952_v55 = vpop.permute.xlu0 %951 }
 0x247   :  { %vm839_vm1 = vcmp.eq.s32.totalorder %v829_v46, %v2323_v7  ;;  %v3485_v46 = vld [vmem:[#allocation25_spill] sm:$0xff] }
 0x248   :  { %vm843_vm5 = vmor %vm2724_vm11, %vm839_vm1  ;;  %vm85_vm1 = vcmp.eq.s32.totalorder %v3469_v16, %v2323_v7 }
 0x249   :  { %vm2763_vm6 = vmor %vm843_vm5, %vm859_vm3  ;;  %vm101_vm3 = vcmp.eq.s32.totalorder %v3468_v15, %v2323_v7  ;;  %vm902_vm5 = vcmp.eq.s32.totalorder %v898_v14, %v2323_v7  ;;  %v3494_v14 = vld [vmem:[#allocation36_spill] sm:$0xff] }
 0x24a   :  { %1688 = vset.pattern.permute.xlu1 %v1863_v51  ;;  %v2768_v49 = vpop.permute.xlu1 %834  ;;  %v969_v26 = vpop.permute.xlu0 %968 }
 0x24b   :  { %1068 = vperm.xlu1 %1688, %v1923_v2  }
 0x24e   :  { %v838_v52 = vpop.permute.xlu1 %837 }
 0x24f   :  { %vm842_vm9 = vcmp.eq.s32.totalorder %v838_v52, %v2323_v7  ;;  %1074 = vperm.xlu1 %1688, %v1925_v3   ;;  %v3489_v52 = vld [vmem:[#allocation27_spill] sm:$0xff] }
 0x250   :  { %vm846_vm10 = vmor %vm2739_vm15, %vm842_vm9  ;;  %vm899_vm15 = vcmp.eq.s32.totalorder %v889_v48, %v2323_v7 }
 0x251   :  { %vm2776_vm11 = vmor %vm846_vm10, %vm862_vm7  ;;  %vm121_vm7 = vcmp.eq.s32.totalorder %v3470_v19, %v2323_v7  ;;  %v3498_v19 = vld [vmem:[#allocation42_spill] sm:$0xff] }
 0x253   :  { %1077 = vperm.xlu1 %1688, %v1929_v5   ;;  %v852_v51 = vpop.permute.xlu1 %851 }
 0x254   :  { %vm860_vm13 = vcmp.eq.s32.totalorder %v852_v51, %v2323_v7  ;;  %v3490_v51 = vld [vmem:[#allocation28_spill] sm:$0xff] }
 0x255   :  { %vm864_vm14 = vmor %vm2748_vm4, %vm860_vm13  ;;  %vm161_vm13 = vcmp.eq.s32.totalorder %v3472_v22, %v2323_v7 }
 0x256   :  { %vm2786_vm0 = vmor %vm864_vm14, %vm880_vm12 }
 0x257   :  { %1691 = vset.pattern.permute.xlu1 %v1864_v62  ;;  %v2791_v11 = vpop.permute.xlu1 %854 }
 0x258   :  { %1091 = vperm.xlu1 %1691, %v1927_v4  }
 0x25c   :  { %1094 = vperm.xlu1 %1691, %v1925_v3   ;;  %v869_v39 = vpop.permute.xlu1 %868 }
 0x25d   :  { %vm879_vm2 = vcmp.eq.s32.totalorder %v869_v39, %v2323_v7  ;;  %v3493_v39 = vld [vmem:[#allocation34_spill] sm:$0xff] }
 0x25e   :  { %vm883_vm8 = vmor %vm2763_vm6, %vm879_vm2 }
 0x25f   :  { %vm2799_vm4 = vmor %vm883_vm8, %vm899_vm15  ;;  %vm920_vm8 = vcmp.eq.s32.totalorder %v912_v21, %v2323_v7 }
 0x260   :  { %1692 = vset.pattern.permute.xlu1 %v1865_v36  ;;  %v2804_v62 = vpop.permute.xlu1 %874  ;;  %vm105_vm6 = vmor %vm85_vm1, %vm101_vm3  ;;  %v3471_v36 = vld [vmem:[#allocation15_spill] sm:$0xff]  ;;  %vm181_vm1 = vcmp.eq.s32.totalorder %v3475_v28, %v2323_v7 }
 0x261   :  { %1108 = vperm.xlu1 %1692, %v1923_v2   ;;  %vm141_vm10 = vcmp.eq.s32.totalorder %v3471_v36, %v2323_v7  ;;  %vm125_vm15 = vmor %vm105_vm6, %vm121_vm7  ;;  %vm221_vm6 = vcmp.eq.s32.totalorder %v3477_v37, %v2323_v7  ;;  %v3499_v36 = vld [vmem:[#allocation46_spill] sm:$0xff] }
 0x262   :  { %vm145_vm2 = vmor %vm125_vm15, %vm141_vm10  ;;  %vm261_vm15 = vcmp.eq.s32.totalorder %v3481_v32, %v2323_v7 }
 0x263   :  { %vm165_vm3 = vmor %vm145_vm2, %vm161_vm13  ;;  %vm281_vm2 = vcmp.eq.s32.totalorder %v3482_v23, %v2323_v7 }
 0x264   :  { %v878_v18 = vpop.permute.xlu1 %877  ;;  %vm185_vm10 = vmor %vm165_vm3, %vm181_vm1  ;;  %vm301_vm3 = vcmp.eq.s32.totalorder %v3483_v30, %v2323_v7  ;;  %v3200_v30 = vld [vmem:[#allocation3 + $0x18] sm:$0xff] }
 0x265   :  { %vm882_vm9 = vcmp.eq.s32.totalorder %v878_v18, %v2323_v7  ;;  %1114 = vperm.xlu1 %1692, %v1925_v3   ;;  %v3497_v18 = vld [vmem:[#allocation39_spill] sm:$0xff] }
 0x266   :  { %vm886_vm12 = vmor %vm2776_vm11, %vm882_vm9  ;;  %vm201_vm9 = vcmp.eq.s32.totalorder %v3476_v34, %v2323_v7 }
 0x267   :  { %vm2822_vm14 = vmor %vm886_vm12, %vm902_vm5  ;;  %vm241_vm12 = vcmp.eq.s32.totalorder %v3480_v50, %v2323_v7 }
 0x268   :  { %vm205_vm13 = vmor %vm185_vm10, %vm201_vm9  ;;  %vm939_vm9 = vcmp.eq.s32.totalorder %v929_v27, %v2323_v7  ;;  %vm321_vm10 = vcmp.eq.s32.totalorder %v3484_v35, %v2323_v7 }
 0x269   :  { %1117 = vperm.xlu1 %1692, %v1929_v5   ;;  %v892_v63 = vpop.permute.xlu1 %891 }
 0x26a   :  { %vm900_vm11 = vcmp.eq.s32.totalorder %v892_v63, %v2323_v7 }
 0x26b   :  { %vm904_vm5 = vmor %vm2786_vm0, %vm900_vm11 }
 0x26c   :  { %vm2837_vm7 = vmor %vm904_vm5, %vm920_vm8 }
 0x26d   :  { %1695 = vset.pattern.permute.xlu1 %v1866_v20  ;;  %v2844_v57 = vpop.permute.xlu1 %894  ;;  %vm225_vm0 = vmor %vm205_vm13, %vm221_vm6  ;;  %vm341_vm13 = vcmp.eq.s32.totalorder %v3485_v46, %v2323_v7 }
 0x26e   :  { %1131 = vperm.xlu1 %1695, %v1927_v4   ;;  %vm245_vm8 = vmor %vm225_vm0, %vm241_vm12 }
 0x26f   :  { %vm265_vm1 = vmor %vm245_vm8, %vm261_vm15  ;;  %vm361_vm15 = vcmp.eq.s32.totalorder %v3486_v33, %v2323_v7  ;;  %vm381_vm8 = vcmp.eq.s32.totalorder %v3489_v52, %v2323_v7 }
 0x270   :  { %vm285_vm11 = vmor %vm265_vm1, %vm281_vm2 }
 0x271   :  { %vm305_vm5 = vmor %vm285_vm11, %vm301_vm3  ;;  %vm421_vm11 = vcmp.eq.s32.totalorder %v3491_v44, %v2323_v7 }
 0x272   :  { %1134 = vperm.xlu1 %1695, %v1925_v3   ;;  %v909_v20 = vpop.permute.xlu1 %908  ;;  %vm325_vm2 = vmor %vm305_vm5, %vm321_vm10  ;;  %vm942_vm10 = vcmp.eq.s32.totalorder %v938_v6, %v2323_v7 }
 0x273   :  { %vm919_vm6 = vcmp.eq.s32.totalorder %v909_v20, %v2323_v7  ;;  %vm345_vm3 = vmor %vm325_vm2, %vm341_vm13  ;;  %vm461_vm2 = vcmp.eq.s32.totalorder %v3493_v39, %v2323_v7 }
 0x274   :  { %vm923_vm12 = vmor %vm2799_vm4, %vm919_vm6  ;;  %vm401_vm4 = vcmp.eq.s32.totalorder %v3490_v51, %v2323_v7 }
 0x275   :  { %vm2864_vm0 = vmor %vm923_vm12, %vm939_vm9 }
 0x276   :  { %1696 = vset.pattern.permute.xlu1 %v1867_v42  ;;  %v2871_v1 = vpop.permute.xlu1 %914  ;;  %vm365_vm1 = vmor %vm345_vm3, %vm361_vm15  ;;  %v3492_v42 = vld [vmem:[#allocation31_spill] sm:$0xff] }
 0x277   :  { %1148 = vperm.xlu1 %1696, %v1923_v2   ;;  %vm385_vm9 = vmor %vm365_vm1, %vm381_vm8  ;;  %vm441_vm12 = vcmp.eq.s32.totalorder %v3492_v42, %v2323_v7  ;;  %vm481_vm8 = vcmp.eq.s32.totalorder %v3494_v14, %v2323_v7 }
 0x278   :  { %vm405_vm5 = vmor %vm385_vm9, %vm401_vm4 }
 0x279   :  { %vm425_vm6 = vmor %vm405_vm5, %vm421_vm11  ;;  %vm960_vm11 = vcmp.eq.s32.totalorder %v952_v55, %v2323_v7  ;;  %vm501_vm5 = vcmp.eq.s32.totalorder %v3497_v18, %v2323_v7 }
 0x27a   :  { %v918_v48 = vpop.permute.xlu1 %917  ;;  %vm445_vm4 = vmor %vm425_vm6, %vm441_vm12  ;;  %vm541_vm6 = vcmp.eq.s32.totalorder %v3499_v36, %v2323_v7 }
 0x27b   :  { %vm922_vm13 = vcmp.eq.s32.totalorder %v918_v48, %v2323_v7  ;;  %1154 = vperm.xlu1 %1696, %v1925_v3   ;;  %vm465_vm1 = vmor %vm445_vm4, %vm461_vm2  ;;  %vm581_vm4 = vcmp.eq.s32.totalorder %v2398_v61, %v2323_v7 }
 0x27c   :  { %vm926_vm15 = vmor %vm2822_vm14, %vm922_vm13  ;;  %vm521_vm13 = vcmp.eq.s32.totalorder %v3498_v19, %v2323_v7 }
 0x27d   :  { %vm2889_vm3 = vmor %vm926_vm15, %vm942_vm10  ;;  %vm561_vm15 = vcmp.eq.s32.totalorder %v2353_v59, %v2323_v7 }
 0x27e   :  { %vm485_vm9 = vmor %vm465_vm1, %vm481_vm8  ;;  %vm601_vm1 = vcmp.eq.s32.totalorder %v2429_v0, %v2323_v7 }
 0x27f   :  { %1157 = vperm.xlu1 %1696, %v1929_v5   ;;  %v932_v16 = vpop.permute.xlu1 %931  ;;  %vm505_vm2 = vmor %vm485_vm9, %vm501_vm5  ;;  %vm621_vm9 = vcmp.eq.s32.totalorder %v2474_v9, %v2323_v7  ;;  %v978_v9 = vpop.permute.xlu0 %977 }
 0x280   :  { %vm940_vm14 = vcmp.eq.s32.totalorder %v932_v16, %v2323_v7  ;;  %vm525_vm8 = vmor %vm505_vm2, %vm521_vm13  ;;  %vm979_vm13 = vcmp.eq.s32.totalorder %v969_v26, %v2323_v7  ;;  %vm641_vm2 = vcmp.eq.s32.totalorder %v2505_v12, %v2323_v7 }
 0x281   :  { %vm944_vm10 = vmor %vm2837_vm7, %vm940_vm14 }
 0x282   :  { %vm2904_vm12 = vmor %vm944_vm10, %vm960_vm11 }
 0x283   :  { %1699 = vset.pattern.permute.xlu1 %v1868_v56  ;;  %v2911_v22 = vpop.permute.xlu1 %934  ;;  %vm545_vm7 = vmor %vm525_vm8, %vm541_vm6  ;;  %vm661_vm8 = vcmp.eq.s32.totalorder %v2550_v31, %v2323_v7  ;;  %v992_v31 = vpop.permute.xlu0 %991 }
 0x284   :  { %1171 = vperm.xlu1 %1699, %v1927_v4   ;;  %vm565_vm11 = vmor %vm545_vm7, %vm561_vm15 }
 0x285   :  { %vm585_vm5 = vmor %vm565_vm11, %vm581_vm4  ;;  %vm681_vm4 = vcmp.eq.s32.totalorder %v2579_v47, %v2323_v7  ;;  %vm701_vm11 = vcmp.eq.s32.totalorder %v2618_v38, %v2323_v7  ;;  %v1877_v47 = vmov 0.0  }
 0x286   :  { %vm605_vm14 = vmor %vm585_vm5, %vm601_vm1  ;;  %vm721_vm5 = vcmp.eq.s32.totalorder %v2649_v60, %v2323_v7 }
 0x287   :  { %vm625_vm10 = vmor %vm605_vm14, %vm621_vm9  ;;  %vm741_vm14 = vcmp.eq.s32.totalorder %v2676_v13, %v2323_v7  ;;  %v1009_v60 = vpop.permute.xlu0 %1008 }
 0x288   :  { %1174 = vperm.xlu1 %1699, %v1925_v3   ;;  %v949_v59 = vpop.permute.xlu1 %948  ;;  %vm645_vm1 = vmor %vm625_vm10, %vm641_vm2  ;;  %vm982_vm10 = vcmp.eq.s32.totalorder %v978_v9, %v2323_v7 }
 0x289   :  { %vm959_vm6 = vcmp.eq.s32.totalorder %v949_v59, %v2323_v7  ;;  %vm665_vm9 = vmor %vm645_vm1, %vm661_vm8  ;;  %vm781_vm1 = vcmp.eq.s32.totalorder %v2714_v29, %v2323_v7 }
 0x28a   :  { %vm963_vm15 = vmor %vm2864_vm0, %vm959_vm6 }
 0x28b   :  { %vm2931_vm7 = vmor %vm963_vm15, %vm979_vm13  ;;  %vm761_vm15 = vcmp.eq.s32.totalorder %v2689_v17, %v2323_v7  ;;  %v1876_v17 = vmov 59  }
 0x28c   :  { %1700 = vset.pattern.permute.xlu1 %v1869_v41  ;;  %v955_v0 = vpop.permute.xlu1 %954  ;;  %vm685_vm0 = vmor %vm665_vm9, %vm681_vm4 }
 0x28d   :  { %1188 = vperm.xlu1 %1700, %v1923_v2   ;;  %vm705_vm13 = vmor %vm685_vm0, %vm701_vm11  ;;  %vm801_vm11 = vcmp.eq.s32.totalorder %v2730_v45, %v2323_v7  ;;  %v1018_v45 = vpop.permute.xlu0 %1017 }
 0x28e   :  { %vm725_vm6 = vmor %vm705_vm13, %vm721_vm5 }
 0x28f   :  { %vm745_vm2 = vmor %vm725_vm6, %vm741_vm14  ;;  %vm1000_vm14 = vcmp.eq.s32.totalorder %v992_v31, %v2323_v7  ;;  %vm821_vm6 = vcmp.eq.s32.totalorder %v2753_v25, %v2323_v7 }
 0x290   :  { %v958_v12 = vpop.permute.xlu1 %957  ;;  %vm765_vm5 = vmor %vm745_vm2, %vm761_vm15  ;;  %vm861_vm2 = vcmp.eq.s32.totalorder %v2791_v11, %v2323_v7 }
 0x291   :  { %vm962_vm8 = vcmp.eq.s32.totalorder %v958_v12, %v2323_v7  ;;  %1194 = vperm.xlu1 %1700, %v1925_v3   ;;  %vm785_vm0 = vmor %vm765_vm5, %vm781_vm1  ;;  %vm901_vm5 = vcmp.eq.s32.totalorder %v2844_v57, %v2323_v7  ;;  %v1032_v11 = vpop.permute.xlu0 %1031 }
 0x292   :  { %vm966_vm4 = vmor %vm2889_vm3, %vm962_vm8  ;;  %vm841_vm8 = vcmp.eq.s32.totalorder %v2768_v49, %v2323_v7 }
 0x293   :  { %vm2954_vm9 = vmor %vm966_vm4, %vm982_vm10  ;;  %vm881_vm4 = vcmp.eq.s32.totalorder %v2804_v62, %v2323_v7 }
 0x294   :  { %vm805_vm13 = vmor %vm785_vm0, %vm801_vm11  ;;  %vm921_vm0 = vcmp.eq.s32.totalorder %v2871_v1, %v2323_v7 }
 0x295   :  { %1197 = vperm.xlu1 %1700, %v1929_v5   ;;  %v972_v56 = vpop.permute.xlu1 %971  ;;  %vm825_vm1 = vmor %vm805_vm13, %vm821_vm6  ;;  %vm941_vm13 = vcmp.eq.s32.totalorder %v2911_v22, %v2323_v7  ;;  %v1049_v37 = vpop.permute.xlu0 %1048 }
 0x296   :  { %vm980_vm3 = vcmp.eq.s32.totalorder %v972_v56, %v2323_v7  ;;  %vm845_vm11 = vmor %vm825_vm1, %vm841_vm8  ;;  %vm1019_vm8 = vcmp.eq.s32.totalorder %v1009_v60, %v2323_v7  ;;  %vm961_vm1 = vcmp.eq.s32.totalorder %v955_v0, %v2323_v7 }
 0x297   :  { %vm984_vm10 = vmor %vm2904_vm12, %vm980_vm3 }
 0x298   :  { %vm2969_vm15 = vmor %vm984_vm10, %vm1000_vm14 }
 0x299   :  { %1702 = vset.pattern.permute.xlu1 %v1871_v8  ;;  %v975_v41 = vpop.permute.xlu1 %974  ;;  %vm865_vm12 = vmor %vm845_vm11, %vm861_vm2  ;;  %v1058_v32 = vpop.permute.xlu0 %1057 }
 0x29a   :  { %1211 = vperm.xlu1 %1702, %v1927_v4   ;;  %vm885_vm14 = vmor %vm865_vm12, %vm881_vm4  ;;  %vm981_vm11 = vcmp.eq.s32.totalorder %v975_v41, %v2323_v7 }
 0x29b   :  { %vm905_vm6 = vmor %vm885_vm14, %vm901_vm5 }
 0x29c   :  { %vm925_vm3 = vmor %vm905_vm6, %vm921_vm0 }
 0x29d   :  { %vm945_vm10 = vmor %vm925_vm3, %vm941_vm13  ;;  %v1072_v52 = vpop.permute.xlu0 %1071 }
 0x29e   :  { %1214 = vperm.xlu1 %1702, %v1925_v3   ;;  %v989_v8 = vpop.permute.xlu1 %988  ;;  %vm965_vm5 = vmor %vm945_vm10, %vm961_vm1  ;;  %vm1040_vm10 = vcmp.eq.s32.totalorder %v1032_v11, %v2323_v7 }
 0x29f   :  { %vm999_vm2 = vcmp.eq.s32.totalorder %v989_v8, %v2323_v7  ;;  %vm985_vm0 = vmor %vm965_vm5, %vm981_vm11  ;;  %vm1059_vm5 = vcmp.eq.s32.totalorder %v1049_v37, %v2323_v7 }
 0x2a0   :  { %vm1003_vm4 = vmor %vm2931_vm7, %vm999_vm2  ;;  %vm1022_vm7 = vcmp.eq.s32.totalorder %v1018_v45, %v2323_v7 }
 0x2a1   :  { %vm2990_vm12 = vmor %vm1003_vm4, %vm1019_vm8  ;;  %v1089_v44 = vpop.permute.xlu0 %1088 }
 0x2a2   :  { %1704 = vset.pattern.permute.xlu1 %v1876_v17  ;;  %v995_v29 = vpop.permute.xlu1 %994 }
 0x2a3   :  { %vm1001_vm14 = vcmp.eq.s32.totalorder %v995_v29, %v2323_v7  ;;  %1251 = vperm.xlu1 %1704, %v1927_v4  }
 0x2a4   :  { %vm2996_vm13 = vmor %vm985_vm0, %vm1001_vm14 }
 0x2a6   :  { %v998_v49 = vpop.permute.xlu1 %997 }
 0x2a7   :  { %vm1002_vm6 = vcmp.eq.s32.totalorder %v998_v49, %v2323_v7  ;;  %1705 = vset.pattern.permute.xlu1 %v1870_v54  ;;  %v3187_v49 = vld [vmem:[#allocation3 + $0x8] sm:$0xff] }
 0x2a8   :  { %vm1006_vm3 = vmor %vm2954_vm9, %vm1002_vm6  ;;  %1228 = vperm.xlu1 %1705, %v1923_v2   ;;  %v1385_v11 = vand.u32 2147483647, %v3187_v49 }
 0x2a9   :  { %vm3006_vm8 = vmor %vm1006_vm3, %vm1022_vm7 }
 0x2ab   :  { %v1012_v63 = vpop.permute.xlu1 %1011 }
 0x2ac   :  { %vm1020_vm1 = vcmp.eq.s32.totalorder %v1012_v63, %v2323_v7  ;;  %1707 = vset.pattern.permute.xlu1 %v1872_v24  ;;  %v3190_v63 = vld [vmem:[#allocation3] sm:$0xff] }
 0x2ad   :  { %vm1024_vm2 = vmor %vm2969_vm15, %vm1020_vm1  ;;  %1271 = vperm.xlu1 %1707, %v1927_v4   ;;  %v1384_v37 = vand.u32 2147483647, %v3190_v63  ;;  %v1424_v59 = vsub.f32 0.0, %v3190_v63 }
 0x2ae   :  { %vm3016_vm9 = vmor %vm1024_vm2, %vm1040_vm10 }
 0x2af   :  { %v1015_v34 = vpop.permute.xlu1 %1014  ;;  %v1388_v23 = vsub.f32 0.0, %v1384_v37  ;;  %v1428_v8 = vmax.f32 %v1424_v59, 0.0 }
 0x2b0   :  { %vm1021_vm11 = vcmp.eq.s32.totalorder %v1015_v34, %v2323_v7  ;;  %v1389_v34 = vsub.f32 0.0, %v1385_v11 }
 0x2b1   :  { %vm1025_vm4 = vmor %vm2996_vm13, %vm1021_vm11  ;;  %1708 = vset.pattern.permute.xlu1 %v1876_v17 }
 0x2b2   :  { %1248 = vperm.xlu1 %1708, %v1923_v2  }
 0x2b4   :  { %v1029_v40 = vpop.permute.xlu1 %1028 }
 0x2b5   :  { %vm1039_vm15 = vcmp.eq.s32.totalorder %v1029_v40, %v2323_v7  ;;  %v3193_v40 = vld [vmem:[#allocation3 + $0x10] sm:$0xff] }
 0x2b6   :  { %vm1043_vm0 = vmor %vm2990_vm12, %vm1039_vm15  ;;  %1254 = vperm.xlu1 %1708, %v1925_v3   ;;  %vm1062_vm12 = vcmp.eq.s32.totalorder %v1058_v32, %v2323_v7 }
 0x2b7   :  { %vm3029_vm14 = vmor %vm1043_vm0, %vm1059_vm5 }
 0x2b8   :  { %v1035_v57 = vpop.permute.xlu1 %1034 }
 0x2b9   :  { %vm1041_vm13 = vcmp.eq.s32.totalorder %v1035_v57, %v2323_v7  ;;  %v1394_v57 = vmul.f32 1.442695, %v1389_v34 }
 0x2ba   :  { %vm3034_vm7 = vmor %vm1025_vm4, %vm1041_vm13  ;;  %1709 = vset.pattern.permute.xlu1 %v1870_v54  ;;  %vm1080_vm13 = vcmp.eq.s32.totalorder %v1072_v52, %v2323_v7  ;;  %v1392_v54 = vmul.f32 1.442695, %v1388_v23 }
 0x2bb   :  { %1237 = vperm.xlu1 %1709, %v1929_v5   ;;  %1721 = vpow2.f32 %v1394_v57 }
 0x2bc   :  { %v1038_v27 = vpop.permute.xlu1 %1037  ;;  %1723 = vpow2.f32 %v1392_v54 }
 0x2bd   :  { %vm1042_vm6 = vcmp.eq.s32.totalorder %v1038_v27, %v2323_v7  ;;  %v1386_v27 = vand.u32 2147483647, %v3193_v40 }
 0x2be   :  { %vm1046_vm3 = vmor %vm3006_vm8, %vm1042_vm6 }
 0x2bf   :  { %vm3044_vm10 = vmor %vm1046_vm3, %vm1062_vm12  ;;  %1710 = vset.pattern.permute.xlu1 %v1872_v24 }
 0x2c0   :  { %1268 = vperm.xlu1 %1710, %v1923_v2  }
 0x2c1   :  { %v1052_v20 = vpop.permute.xlu1 %1051 }
 0x2c2   :  { %vm1060_vm1 = vcmp.eq.s32.totalorder %v1052_v20, %v2323_v7 }
 0x2c3   :  { %vm3053_vm2 = vmor %vm3016_vm9, %vm1060_vm1  ;;  %vm1099_vm1 = vcmp.eq.s32.totalorder %v1089_v44, %v2323_v7 }
 0x2c4   :  { %1712 = vset.pattern.permute.xlu1 %v1874_v43 }
 0x2c5   :  { %1311 = vperm.xlu1 %1712, %v1927_v4   ;;  %v1055_v35 = vpop.permute.xlu1 %1054  ;;  %v1722_v51 = vpop.eup %1721 }
 0x2c6   :  { %vm1061_vm8 = vcmp.eq.s32.totalorder %v1055_v35, %v2323_v7  ;;  %v1390_v35 = vsub.f32 0.0, %v1386_v27 }
 0x2c7   :  { %vm1065_vm11 = vmor %vm3034_vm7, %vm1061_vm8 }
 0x2c8   :  { %vm1084_vm7 = vmor %vm3053_vm2, %vm1080_vm13  ;;  %v1396_v58 = vmul.f32 1.442695, %v1390_v35 }
 0x2c9   :  { %1713 = vset.pattern.permute.xlu1 %v1876_v17 }
 0x2ca   :  { %1257 = vperm.xlu1 %1713, %v1929_v5   ;;  %v1069_v24 = vpop.permute.xlu1 %1068  ;;  %1725 = vpow2.f32 %v1396_v58 }
 0x2cb   :  { %vm1079_vm4 = vcmp.eq.s32.totalorder %v1069_v24, %v2323_v7  ;;  %v1387_v24 = vand.u32 2147483647, %v3200_v30 }
 0x2cc   :  { %vm3066_vm9 = vmor %vm3029_vm14, %vm1079_vm4 }
 0x2cd   :  { %vm1103_vm2 = vmor %vm3066_vm9, %vm1099_vm1  ;;  %v1391_v52 = vsub.f32 0.0, %v1387_v24 }
 0x2ce   :  { %1714 = vset.pattern.permute.xlu1 %v1873_v10  ;;  %v1075_v33 = vpop.permute.xlu1 %1074 }
 0x2cf   :  { %vm1081_vm5 = vcmp.eq.s32.totalorder %v1075_v33, %v2323_v7  ;;  %1294 = vperm.xlu1 %1714, %v1925_v3  }
 0x2d0   :  { %vm3073_vm15 = vmor %vm1065_vm11, %vm1081_vm5 }
 0x2d2   :  { %v1078_v1 = vpop.permute.xlu1 %1077 }
 0x2d3   :  { %vm1082_vm0 = vcmp.eq.s32.totalorder %v1078_v1, %v2323_v7  ;;  %1715 = vset.pattern.permute.xlu1 %v1875_v53 }
 0x2d4   :  { %vm3081_vm14 = vmor %vm3044_vm10, %vm1082_vm0  ;;  %1331 = vperm.xlu1 %1715, %v1927_v4  }
 0x2d7   :  { %v1092_v10 = vpop.permute.xlu1 %1091 }
 0x2d8   :  { %vm1100_vm12 = vcmp.eq.s32.totalorder %v1092_v10, %v2323_v7  ;;  %1717 = vset.pattern.permute.xlu1 %v1874_v43  ;;  %v1098_v43 = vpop.permute.xlu0 %1097  ;;  %v1398_v10 = vmul.f32 1.442695, %v1391_v52 }
 0x2d9   :  { %vm3091_vm6 = vmor %vm1084_vm7, %vm1100_vm12  ;;  %1308 = vperm.xlu1 %1717, %v1923_v2   ;;  %vm1102_vm5 = vcmp.eq.s32.totalorder %v1098_v43, %v2323_v7  ;;  %v1724_v43 = vpop.eup %1723 }
 0x2da   :  { %vm1106_vm9 = vmor %vm3081_vm14, %vm1102_vm5  ;;  %1727 = vpow2.f32 %v1398_v10  ;;  %v1726_v55 = vpop.eup %1725 }
 0x2db   :  { %v1095_v48 = vpop.permute.xlu1 %1094 }
 0x2dc   :  { %vm1101_vm3 = vcmp.eq.s32.totalorder %v1095_v48, %v2323_v7  ;;  %v1112_v14 = vpop.permute.xlu0 %1111  ;;  %v1401_v48 = vadd.f32 1.0, %v1722_v51 }
 0x2dd   :  { %vm1105_vm10 = vmor %vm3073_vm15, %vm1101_vm3  ;;  %1314 = vperm.xlu1 %1717, %v1925_v3   ;;  %vm1120_vm7 = vcmp.eq.s32.totalorder %v1112_v14, %v2323_v7 }
 0x2de   :  { %vm1124_vm12 = vmor %vm3091_vm6, %vm1120_vm7  ;;  %1729 = vlog2.f32 %v1401_v48  ;;  %v1517_v48 = vld [vmem:[%s3351_s2] ss:$0 sm:$0xff]  ;;  %s1878_s2 = smov [#allocation8]  }
 0x2df   :  { %s1503_s11 = sshll.u32 %s1878_s2, 4  ;;  %s1504_s11 = int_to_ptr.vmem [resolvable:$true] %s1503_s11 }
 0x2e0   :  { %v1109_v4 = vpop.permute.xlu1 %1108  ;;  %v1129_v16 = vpop.permute.xlu0 %1128  ;;  %s1781_s12 = scalar_lea.vmem %s1504_s11, 128  ;;  %p1786_p3 = scmp.lt.s32.totalorder %s1504_s11, %s1504_s11 }
 0x2e1   :  { %vm1119_vm8 = vcmp.eq.s32.totalorder %v1109_v4, %v2323_v7  ;;  %1718 = vset.pattern.permute.xlu1 %v1875_v53  ;;  %p1782_p2 = scmp.ne.s32.totalorder %s1504_s11, %s1781_s12  ;;  %p1787_p4 = scmp.lt.s32.totalorder %s1781_s12, %s1781_s12 }
 0x2e2   :  { %vm3105_vm11 = vmor %vm1103_vm2, %vm1119_vm8  ;;  %1328 = vperm.xlu1 %1718, %v1923_v2   ;;  %vm1139_vm2 = vcmp.eq.s32.totalorder %v1129_v16, %v2323_v7  ;;  %v1425_v16 = vsub.f32 0.0, %v3187_v49 }
 0x2e3   :  { %vm1143_vm8 = vmor %vm3105_vm11, %vm1139_vm2  ;;  %p1788_p5 = por %p1787_p4, %p1786_p3 }
 0x2e4   :  { %v1115_v39 = vpop.permute.xlu1 %1114  ;;  %v1138_v19 = vpop.permute.xlu0 %1137 }
 0x2e5   :  { %vm1121_vm4 = vcmp.eq.s32.totalorder %v1115_v39, %v2323_v7  ;;  %v1400_v39 = vadd.f32 1.0, %v1724_v43  ;;  %v1728_v2 = vpop.eup %1727  ;;  %p1789_p6 = pnand %p1788_p5, %p1782_p2 }
 0x2e6   :  { %vm3112_vm15 = vmor %vm1105_vm10, %vm1121_vm4  ;;  %1334 = vperm.xlu1 %1718, %v1925_v3  }
 0x2e7   :  { %1731 = vlog2.f32 %v1400_v39 }
 0x2e8   :  { %v1118_v53 = vpop.permute.xlu1 %1117  ;;  %v1152_v22 = vpop.permute.xlu0 %1151 }
 0x2e9   :  { %vm1122_vm0 = vcmp.eq.s32.totalorder %v1118_v53, %v2323_v7  ;;  %v1402_v53 = vadd.f32 1.0, %v1726_v55 }
 0x2ea   :  { %vm3120_vm13 = vmor %vm1106_vm9, %vm1122_vm0  ;;  %1337 = vperm.xlu1 %1718, %v1929_v5   ;;  %vm1142_vm9 = vcmp.eq.s32.totalorder %v1138_v19, %v2323_v7 }
 0x2eb   :  { %1733 = vlog2.f32 %v1402_v53 }
 0x2ec   :  { %v1169_v9 = vpop.permute.xlu0 %1168 }
 0x2ed   :  { %v1132_v15 = vpop.permute.xlu1 %1131 }
 0x2ee   :  { %vm1140_vm3 = vcmp.eq.s32.totalorder %v1132_v15, %v2323_v7 }
 0x2ef   :  { %vm3129_vm10 = vmor %vm1124_vm12, %vm1140_vm3  ;;  %vm1160_vm12 = vcmp.eq.s32.totalorder %v1152_v22, %v2323_v7 }
 0x2f0   :  { %vm1164_vm3 = vmor %vm3129_vm10, %vm1160_vm12  ;;  %v1178_v38 = vpop.permute.xlu0 %1177 }
 0x2f1   :  { %v1135_v18 = vpop.permute.xlu1 %1134 }
 0x2f2   :  { %vm1141_vm14 = vcmp.eq.s32.totalorder %v1135_v18, %v2323_v7  ;;  %v1403_v18 = vadd.f32 1.0, %v1728_v2 }
 0x2f3   :  { %vm1145_vm1 = vmor %vm3112_vm15, %vm1141_vm14 }
 0x2f4   :  { %vm1146_vm15 = vmor %vm3120_vm13, %vm1142_vm9  ;;  %v1192_v45 = vpop.permute.xlu0 %1191  ;;  %1735 = vlog2.f32 %v1403_v18 }
 0x2f6   :  { %v1149_v5 = vpop.permute.xlu1 %1148 }
 0x2f7   :  { %vm1159_vm6 = vcmp.eq.s32.totalorder %v1149_v5, %v2323_v7  ;;  %v1730_v5 = vpop.eup %1729 }
 0x2f8   :  { %vm3140_vm4 = vmor %vm1143_vm8, %vm1159_vm6  ;;  %vm1179_vm8 = vcmp.eq.s32.totalorder %v1169_v9, %v2323_v7  ;;  %v1232_v28 = vpop.permute.xlu0 %1231  ;;  %v1407_v22 = vmul.f32 0.6931472, %v1730_v5 }
 0x2f9   :  { %vm1183_vm6 = vmor %vm3140_vm4, %vm1179_vm8 }
 0x2fa   :  { %v1155_v21 = vpop.permute.xlu1 %1154 }
 0x2fb   :  { %vm1161_vm5 = vcmp.eq.s32.totalorder %v1155_v21, %v2323_v7  ;;  %v1413_v21 = vmax.f32 %v3187_v49, 0.0  ;;  %v1412_v49 = vmax.f32 %v3190_v63, 0.0  ;;  %v1427_v63 = vsub.f32 0.0, %v3200_v30 }
 0x2fc   :  { %vm1165_vm0 = vmor %vm1145_vm1, %vm1161_vm5  ;;  %v3197_v32 = vpop.permute.xlu0 %1234 }
 0x2fd   :  { %v1417_v9 = vadd.f32 %v1413_v21, %v1407_v22 }
 0x2fe   :  { %v1158_v26 = vpop.permute.xlu1 %1157 }
 0x2ff   :  { %vm1162_vm11 = vcmp.eq.s32.totalorder %v1158_v26, %v2323_v7  ;;  %v1429_v26 = vmax.f32 %v1425_v16, 0.0 }
 0x300   :  { %vm3149_vm7 = vmor %vm1146_vm15, %vm1162_vm11  ;;  %vm1182_vm15 = vcmp.eq.s32.totalorder %v1178_v38, %v2323_v7  ;;  %v1209_v46 = vpop.permute.xlu0 %1208 }
 0x301   :  { %vm1186_vm4 = vmor %vm3149_vm7, %vm1182_vm15  ;;  %vm1200_vm7 = vcmp.eq.s32.totalorder %v1192_v45, %v2323_v7  ;;  %v1433_v38 = vadd.f32 %v1429_v26, %v1407_v22  ;;  %v1421_v45 = vmin.f32 %v1417_v9, 100.0 }
 0x303   :  { %v1172_v61 = vpop.permute.xlu1 %1171 }
 0x304   :  { %vm1180_vm14 = vcmp.eq.s32.totalorder %v1172_v61, %v2323_v7  ;;  %v1218_v1 = vpop.permute.xlu0 %1217  ;;  %v1732_v61 = vpop.eup %1731 }
 0x305   :  { %vm3157_vm1 = vmor %vm1164_vm3, %vm1180_vm14 }
 0x306   :  { %vm1204_vm14 = vmor %vm3157_vm1, %vm1200_vm7 }
 0x307   :  { %v1175_v12 = vpop.permute.xlu1 %1174 }
 0x308   :  { %vm1181_vm13 = vcmp.eq.s32.totalorder %v1175_v12, %v2323_v7  ;;  %v3209_v44 = vpop.permute.xlu0 %1274 }
 0x309   :  { %vm1185_vm2 = vmor %vm1165_vm0, %vm1181_vm13  ;;  %vm1240_vm13 = vcmp.eq.s32.totalorder %v1232_v28, %v2323_v7  ;;  %v1437_v28 = vmin.f32 %v1433_v38, 100.0 }
 0x30c   :  { %v1189_v31 = vpop.permute.xlu1 %1188  ;;  %v3212_v42 = vpop.permute.xlu0 %1277 }
 0x30d   :  { %vm1199_vm5 = vcmp.eq.s32.totalorder %v1189_v31, %v2323_v7 }
 0x30e   :  { %vm3166_vm10 = vmor %vm1183_vm6, %vm1199_vm5 }
 0x310   :  { %v1195_v56 = vpop.permute.xlu1 %1194  ;;  %v1292_v15 = vpop.permute.xlu0 %1291 }
 0x311   :  { %vm1201_vm9 = vcmp.eq.s32.totalorder %v1195_v56, %v2323_v7  ;;  %vm1300_vm1 = vcmp.eq.s32.totalorder %v1292_v15, %v2323_v7 }
 0x312   :  { %vm3172_vm11 = vmor %vm1185_vm2, %vm1201_vm9 }
 0x314   :  { %v1198_v60 = vpop.permute.xlu1 %1197  ;;  %v1289_v31 = vpop.permute.xlu0 %1288 }
 0x315   :  { %vm1202_vm0 = vcmp.eq.s32.totalorder %v1198_v60, %v2323_v7  ;;  %v1405_v60 = vmul.f32 0.6931472, %v1732_v61 }
 0x316   :  { %vm3179_vm12 = vmor %vm1186_vm4, %vm1202_vm0 }
 0x317   :  { %v1432_v34 = vadd.f32 %v1428_v8, %v1405_v60  ;;  %v1416_v27 = vadd.f32 %v1412_v49, %v1405_v60  ;;  %v3566_v49 = vlaneseq }
 0x318   :  { %v1298_v11 = vpop.permute.xlu0 %1297 }
 0x319   :  { %v1212_v13 = vpop.permute.xlu1 %1211  ;;  %v1420_v10 = vmin.f32 %v1416_v27, 100.0 }
 0x31a   :  { %vm1220_vm3 = vcmp.eq.s32.totalorder %v1212_v13, %v2323_v7  ;;  %v1426_v13 = vsub.f32 0.0, %v3193_v40 }
 0x31b   :  { %vm1224_vm2 = vmor %vm1204_vm14, %vm1220_vm3  ;;  %vm1219_vm3 = vcmp.eq.s32.totalorder %v1209_v46, %v2323_v7  ;;  %vm1222_vm14 = vcmp.eq.s32.totalorder %v1218_v1, %v2323_v7  ;;  %v1436_v46 = vmin.f32 %v1432_v34, 100.0  ;;  %v1431_v1 = vmax.f32 %v1427_v63, 0.0 }
 0x31c   :  { %vm1244_vm5 = vmor %vm1224_vm2, %vm1240_vm13  ;;  %v1318_v52 = vpop.permute.xlu0 %1317 }
 0x31d   :  { %v3183_v17 = vpop.permute.xlu1 %1214 }
 0x31e   :  { %vm1221_vm9 = vcmp.eq.s32.totalorder %v3183_v17, %v2323_v7  ;;  %v1734_v17 = vpop.eup %1733 }
 0x31f   :  { %vm3231_vm7 = vmor %vm3172_vm11, %vm1221_vm9  ;;  %vm1241_vm11 = vcmp.eq.s32.totalorder %v3197_v32, %v2323_v7  ;;  %v1409_v37 = vmul.f32 0.6931472, %v1734_v17  ;;  %v1736_v57 = vpop.eup %1735 }
 0x320   :  { %v1411_v58 = vmul.f32 0.6931472, %v1736_v57 }
 0x322   :  { %v1252_v29 = vpop.permute.xlu1 %1251  ;;  %v1435_v55 = vadd.f32 %v1431_v1, %v1411_v58 }
 0x323   :  { %vm1260_vm8 = vcmp.eq.s32.totalorder %v1252_v29, %v2323_v7 }
 0x324   :  { %vm1264_vm15 = vmor %vm1244_vm5, %vm1260_vm8 }
 0x325   :  { %vm1223_vm5 = vmor %vm3166_vm10, %vm1219_vm3 }
 0x327   :  { %v3185_v25 = vpop.permute.xlu1 %1228 }
 0x328   :  { %vm1239_vm9 = vcmp.eq.s32.totalorder %v3185_v25, %v2323_v7 }
 0x32c   :  { %v1272_v62 = vpop.permute.xlu1 %1271 }
 0x32d   :  { %vm1280_vm6 = vcmp.eq.s32.totalorder %v1272_v62, %v2323_v7 }
 0x32e   :  { %vm1284_vm4 = vmor %vm1264_vm15, %vm1280_vm6 }
 0x32f   :  { %vm1304_vm13 = vmor %vm1284_vm4, %vm1300_vm1 }
 0x330   :  { %vm3250_vm15 = vmor %vm3179_vm12, %vm1222_vm14 }
 0x331   :  { %v3195_v50 = vpop.permute.xlu1 %1248  ;;  %vm3258_vm1 = vmor %vm3231_vm7, %vm1241_vm11  ;;  %vm1299_vm11 = vcmp.eq.s32.totalorder %v1289_v31, %v2323_v7 }
 0x332   :  { %vm1259_vm4 = vcmp.eq.s32.totalorder %v3195_v50, %v2323_v7  ;;  %vm1243_vm12 = vmor %vm1223_vm5, %vm1239_vm9  ;;  %v1430_v50 = vmax.f32 %v1426_v13, 0.0  ;;  %vm1282_vm5 = vcmp.eq.s32.totalorder %v3212_v42, %v2323_v7 }
 0x333   :  { %vm1263_vm7 = vmor %vm1243_vm12, %vm1259_vm4 }
 0x335   :  { %v3202_v20 = vpop.permute.xlu1 %1254 }
 0x336   :  { %vm1261_vm10 = vcmp.eq.s32.totalorder %v3202_v20, %v2323_v7  ;;  %v1414_v20 = vmax.f32 %v3193_v40, 0.0  ;;  %v1415_v40 = vmax.f32 %v3200_v30, 0.0 }
 0x337   :  { %vm3275_vm14 = vmor %vm3258_vm1, %vm1261_vm10  ;;  %vm1302_vm10 = vcmp.eq.s32.totalorder %v1298_v11, %v2323_v7  ;;  %v1358_v11 = vshrl.u32 %v3566_v49, 7 }
 0x338   :  { %v1418_v51 = vadd.f32 %v1414_v20, %v1409_v37  ;;  %v1419_v39 = vadd.f32 %v1415_v40, %v1411_v58 }
 0x33a   :  { %v3205_v33 = vpop.permute.xlu1 %1237  ;;  %v1422_v15 = vmin.f32 %v1418_v51, 100.0  ;;  %v1423_v19 = vmin.f32 %v1419_v39, 100.0 }
 0x33f   :  { %v3207_v6 = vpop.permute.xlu1 %1268 }
 0x340   :  { %vm1279_vm3 = vcmp.eq.s32.totalorder %v3207_v6, %v2323_v7 }
 0x344   :  { %v1312_v4 = vpop.permute.xlu1 %1311 }
 0x345   :  { %vm1320_vm0 = vcmp.eq.s32.totalorder %v1312_v4, %v2323_v7 }
 0x346   :  { %vm1324_vm2 = vmor %vm1304_vm13, %vm1320_vm0  ;;  %vm1242_vm0 = vcmp.eq.s32.totalorder %v3205_v33, %v2323_v7  ;;  %v1434_v33 = vadd.f32 %v1430_v50, %v1409_v37 }
 0x348   :  { %v1438_v42 = vmin.f32 %v1434_v33, 100.0 }
 0x349   :  { %v3215_v14 = vpop.permute.xlu1 %1257 }
 0x34a   :  { %vm1262_vm13 = vcmp.eq.s32.totalorder %v3215_v14, %v2323_v7 }
 0x34e   :  { %v3222_v3 = vpop.permute.xlu1 %1294 }
 0x353   :  { %v1332_v36 = vpop.permute.xlu1 %1331 }
 0x354   :  { %vm1340_vm8 = vcmp.eq.s32.totalorder %v1332_v36, %v2323_v7  ;;  %v1439_v36 = vmin.f32 %v1435_v55, 100.0 }
 0x355   :  { %vm1344_vm6 = vmor %vm1324_vm2, %vm1340_vm8  ;;  %vm1281_vm2 = vcmp.eq.s32.totalorder %v3209_v44, %v2323_v7 }
 0x356   :  { %v1514_v56 = vsel %vm1344_vm6, 1.0, %v1877_v47  ;;  %vm1246_vm8 = vmor %vm3250_vm15, %vm1242_vm0  ;;  %vm1301_vm0 = vcmp.eq.s32.totalorder %v3222_v3, %v2323_v7 }
 0x357   :  { %v1445_v25 = vsub.f32 1.0, %v1514_v56  ;;  %vm1283_vm6 = vmor %vm1263_vm7, %vm1279_vm3  ;;  %v1441_v35 = vmul.f32 %v1514_v56, %v1437_v28 }
 0x358   :  { %v1309_v41 = vpop.permute.xlu1 %1308  ;;  %vm1266_vm9 = vmor %vm1246_vm8, %vm1262_vm13  ;;  %vm1322_vm8 = vcmp.eq.s32.totalorder %v1318_v52, %v2323_v7 }
 0x359   :  { %vm3295_vm15 = vmor %vm3275_vm14, %vm1281_vm2  ;;  %v1449_v23 = vmul.f32 %v1445_v25, %v1421_v45  ;;  %vm1319_vm4 = vcmp.eq.s32.totalorder %v1309_v41, %v2323_v7 }
 0x35a   :  { %vm1303_vm1 = vmor %vm1283_vm6, %vm1299_vm11 }
 0x35b   :  { %vm3304_vm12 = vmor %vm1266_vm9, %vm1282_vm5  ;;  %v1453_v6 = vadd.f32 %v1449_v23, %v1441_v35 }
 0x35c   :  { %v1315_v62 = vpop.permute.xlu1 %1314  ;;  %vm1323_vm7 = vmor %vm1303_vm1, %vm1319_vm4 }
 0x35d   :  { %vm1321_vm14 = vcmp.eq.s32.totalorder %v1315_v62, %v2323_v7  ;;  %vm3317_vm2 = vmor %vm3304_vm12, %vm1302_vm10  ;;  %v1463_v14 = vmul.f32 %v1517_v48, %v1453_v6  ;;  %vm1494_vm10 = vcmp.eq.s32.totalorder %v1358_v11, 0 }
 0x35e   :  { %vm1305_vm11 = vmor %vm3295_vm15, %vm1301_vm0 }
 0x35f   :  { %vm1325_vm6 = vmor %vm1305_vm11, %vm1321_vm14  ;;  %v1467_v21 = vmul.f32 0.0, %v1463_v14 }
 0x360   :  { %vm1326_vm15 = vmor %vm3317_vm2, %vm1322_vm8 }
 0x361   :  { %v1329_v24 = vpop.permute.xlu1 %1328 }
 0x362   :  { %vm1339_vm3 = vcmp.eq.s32.totalorder %v1329_v24, %v2323_v7 }
 0x363   :  { %vm1343_vm13 = vmor %vm1323_vm7, %vm1339_vm3 }
 0x364   :  { %v1513_v30 = vsel %vm1343_vm13, 1.0, %v1877_v47 }
 0x365   :  { %v1444_v4 = vsub.f32 1.0, %v1513_v30  ;;  %v1335_v43 = vpop.permute.xlu1 %1334  ;;  %v1440_v53 = vmul.f32 %v1513_v30, %v1436_v46 }
 0x366   :  { %vm1341_vm5 = vcmp.eq.s32.totalorder %v1335_v43, %v2323_v7 }
 0x367   :  { %v1448_v2 = vmul.f32 %v1444_v4, %v1420_v10  ;;  %vm1345_vm9 = vmor %vm1325_vm6, %vm1341_vm5 }
 0x368   :  { %v1515_v3 = vsel %vm1345_vm9, 1.0, %v1877_v47 }
 0x369   :  { %v1452_v16 = vadd.f32 %v1448_v2, %v1440_v53  ;;  %v1446_v18 = vsub.f32 1.0, %v1515_v3  ;;  %v1338_v5 = vpop.permute.xlu1 %1337  ;;  %v1442_v26 = vmul.f32 %v1515_v3, %v1438_v42 }
 0x36a   :  { %vm1342_vm4 = vcmp.eq.s32.totalorder %v1338_v5, %v2323_v7 }
 0x36b   :  { %v1462_v22 = vmul.f32 %v1517_v48, %v1452_v16  ;;  %v1450_v59 = vmul.f32 %v1446_v18, %v1422_v15  ;;  %vm1346_vm1 = vmor %vm1326_vm15, %vm1342_vm4 }
 0x36c   :  { %v1516_v61 = vsel %vm1346_vm1, 1.0, %v1877_v47 }
 0x36d   :  { %v1485_v0 = vadd.f32 %v1467_v21, %v1462_v22  ;;  %v1454_v9 = vadd.f32 %v1450_v59, %v1442_v26  ;;  %v1447_v12 = vsub.f32 1.0, %v1516_v61  ;;  %v1443_v56 = vmul.f32 %v1516_v61, %v1439_v36 }
 0x36f   :  { %v1464_v31 = vmul.f32 %v1517_v48, %v1454_v9  ;;  %v1451_v38 = vmul.f32 %v1447_v12, %v1423_v19 }
 0x371   :  { %v1468_v41 = vmul.f32 0.0, %v1464_v31  ;;  %v1455_v60 = vadd.f32 %v1451_v38, %v1443_v56 }
 0x373   :  { %v1486_v8 = vadd.f32 %v1485_v0, %v1468_v41  ;;  %v1465_v13 = vmul.f32 %v1517_v48, %v1455_v60 }
 0x375   :  { %v1469_v7 = vmul.f32 0.0, %v1465_v13 }
 0x377   :  { %v1487_v17 = vadd.f32 %v1486_v8, %v1469_v7 }
 0x379   :  { %v1488_v29 = vrot.slane %v1487_v17, 4 }
 0x37b   :  { %v1489_v45 = vadd.f32 %v1488_v29, %v1487_v17 }
 0x37d   :  { %v1490_v25 = vrot.slane %v1489_v45, 2 }
 0x37f   :  { %v1491_v62 = vadd.f32 %v1490_v25, %v1489_v45 }
 0x381   :  { %v1492_v28 = vrot.slane %v1491_v62, 1 }
 0x383   :  { %v1493_v47 = vadd.f32 %v1492_v28, %v1491_v62 }
 0x385   :  { %v1495_v34 = vsel %vm1494_vm10, %v1493_v47, 0.0 }
 0x386   :  { %1496 = vst [vmem:[#allocation8] sm:$0xff] %v1495_v34 }
 0x387   :  { %1792 = shalt.err (!%p1789_p6)
}
 0x388   :  { %s1793_s15 = scalar_lea.hbm %s3352_s3, 128 }
 0x389   :  { %p1794_p7 = scmp.ne.s32.totalorder %s3352_s3, %s1793_s15  ;;  %p1797_p8 = scmp.lt.u32.totalorder %s1793_s15, %s3352_s3 }
 0x38b   :  { %p1799_p9 = pnand %p1797_p8, %p1794_p7 }
 0x38d   :  { %1802 = shalt.err (!%p1799_p9)
}
 0x38e   :  { %1506 = dma.vmem_to_hbm [thread:$0]  %s1504_s11, 128, %s3352_s3, [#allocation5]  }
 0x38f   :  { %1807 = dma.done.wait [#allocation5], 128  }
 0x390   :  { %1808 = vsyncadd [#allocation5], 4294967168 }
 0x391   :  { %1510 = vsyncpa [#allocation4], 1 }
 0x392   :  { %1511 = vsyncpa [#allocation7], 1 }
 0x393   :  { %1512 = vsyncpa [#allocation5], 1 }

</bundles_post_ra>
